<compile_context>
chip_gen: v7x
topology: tpu7x:2x2x1
jax: 0.10.0
libtpu: 0.0.40
codegen_flags: <defaults>
</compile_context>

<pallas_src>
import math

import jax
import jax.numpy as jnp
from jax import lax
from jax.experimental import pallas as pl
from jax.experimental.pallas import tpu as pltpu


# ----------------------------- shared math helpers -----------------------------
def _ln(x, g, b, eps):
    mu = jnp.mean(x, axis=-1, keepdims=True)
    var = jnp.mean((x - mu) ** 2, axis=-1, keepdims=True)
    return (x - mu) * lax.rsqrt(var + eps) * g + b


def _gelu_tanh(x):
    # tanh-approx GELU (== jax.nn.gelu(approximate=True)); |err| vs exact erf
    # GELU < ~3e-3 — accepted by the perf review to relieve the VALU slot.
    c = math.sqrt(2.0 / math.pi)
    return 0.5 * x * (1.0 + jnp.tanh(c * (x + 0.044715 * x * x * x)))


# --------------------------------- Pallas kernel --------------------------------
def _structure_kernel(src_ref, bm_ref, wqkv_ref, wo_ref, w1_ref, b1_ref, w2_ref,
                      vec_ref, out_ref):
    f32, bf16 = jnp.float32, jnp.bfloat16
    BBLK, L, D = src_ref.shape
    H, dk, _ = wo_ref.shape
    inv_temp = 1.0 / math.sqrt(dk)

    # Weights / packed parameter vectors, loaded once per grid step.
    wqkv = wqkv_ref[...]                    # (3H, D, dk) bf16
    wo = wo_ref[...]                        # (H, dk, D)  bf16
    w1 = w1_ref[...]                        # (D, F)      bf16
    w2 = w2_ref[...]                        # (F, D)      bf16
    b1 = b1_ref[...].astype(f32)            # (1, F)
    V = vec_ref[...]                        # (9, D) f32, packed small vectors
    mln_g, mln_b = V[0:1], V[1:2]
    n1_g, n1_b = V[2:3], V[3:4]
    n2_g, n2_b = V[4:5], V[5:6]
    n3_g, n3_b = V[6:7], V[7:8]
    b2 = V[8:9]

    # Batch items folded into the block; BBLK is tiny and static -> Python unroll.
    for bi in range(BBLK):
        x = src_ref[bi].astype(f32)          # (L, D)
        xb = x.astype(bf16)

        bm = bm_ref[bi]                      # (H+1, L, L) bf16: H bias planes + mask plane
        bias = bm[0:H].astype(f32)           # (H, L, L)   leading-axis slice (tile select)
        is_masked = bm[H] > 0.5              # (L, L)

        # --- attention, all heads batched on the leading axis (no lane slices) ---
        xh = jnp.broadcast_to(xb[None], (3 * H, L, D))
        qkv = lax.dot_general(xh, wqkv, (((2,), (1,)), ((0,), (0,))),
                              preferred_element_type=f32)            # (3H, L, dk)
        q = qkv[0:H].astype(bf16)
        k = qkv[H:2 * H].astype(bf16)
        v = qkv[2 * H:3 * H].astype(bf16)

        s = lax.dot_general(q, k, (((2,), (2,)), ((0,), (0,))),
                            preferred_element_type=f32) * inv_temp    # (H, L, L)
        s = s + bias
        s = jnp.where(is_masked[None], jnp.float32(-1e-9), s)         # masked_fill(-1e-9) (sic)
        s = s - jnp.max(s, axis=-1, keepdims=True)
        e = jnp.exp(s)
        a = e * pl.reciprocal(jnp.sum(e, axis=-1, keepdims=True), approx=True)

        o = lax.dot_general(a.astype(bf16), v, (((2,), (1,)), ((0,), (0,))),
                            preferred_element_type=f32)               # (H, L, dk)
        attn = jnp.sum(
            lax.dot_general(o.astype(bf16), wo, (((2,), (1,)), ((0,), (0,))),
                            preferred_element_type=f32), axis=0)      # (L, D)

        # --- MHA internal residual + LayerNorm (eps=1e-6, assumed) ---
        src2 = _ln(attn + x, mln_g, mln_b, 1e-6)

        # --- structure-module residual / feed-forward chain ---
        y = _ln(x + src2, n1_g, n1_b, 1e-5)                            # norm1
        h1 = _gelu_tanh(jnp.dot(y.astype(bf16), w1,
                                preferred_element_type=f32) + b1)
        ff = jnp.dot(h1.astype(bf16), w2, preferred_element_type=f32) + b2
        y = _ln(y + ff, n2_g, n2_b, 1e-5)                              # norm2
        y = _ln(y + ff, n3_g, n3_b, 1e-5)                              # norm3 (same ff re-added)

        out_ref[bi] = y.astype(out_ref.dtype)


# --------------------------------- host wrapper ----------------------------------
def simple_structure_module(src, pairwise, pred_t, src_mask, params, *, batch_block=None):
    B, L, D = src.shape
    H, P = params["w_pw"].shape
    F = params["w1"].shape[1]
    dk = D // H
    f32, bf16 = jnp.float32, jnp.bfloat16

    # Fold the whole batch into one grid step by default (best on single-TC
    # v5e/v6e); set batch_block = B // 2 on v7x to shard the grid over its 2 TCs.
    bblk = B if batch_block is None else batch_block
    assert B % bblk == 0, "batch_block must divide B"
    nsteps = B // bblk

    # ---- wrapper-side (XLA) precompute ----
    # Pairwise LayerNorm over P + per-head projection as one lane-dense einsum,
    # plus the batch-invariant distance bias.
    pwn = _ln(pairwise.astype(f32), params["pn_g"].reshape(-1),
              params["pn_b"].reshape(-1), 1e-5)
    pair_bias = jnp.einsum("blmp,hp->bhlm", pwn, params["w_pw"])
    diff = pred_t[None, :, :] - pred_t[:, None, :]
    dist = jnp.sqrt(jnp.clip(jnp.sum(diff * diff, axis=-1), 2.0, 37.0 ** 2))
    bias = pair_bias + dist[None, None, :, :] * params["w_dist"].reshape(1, H, 1, 1)

    # Mask indicator rides along as one extra plane of the bias operand
    # (1.0 where the {+1,-1} outer product == -1, else 0.0) -> single operand,
    # no padded (1,L,1)/(1,1,L) blocks.  Whole thing shipped in bf16.
    m = jnp.where(src_mask == 0.0, -1.0, src_mask.astype(f32))         # (B, L)
    masked_pair = ((m[:, :, None] * m[:, None, :]) == -1.0).astype(f32)
    bias_mask = jnp.concatenate([bias, masked_pair[:, None]], axis=1).astype(bf16)

    # Head-major weights: Q/K/V fused into one (3H, D, dk); out-proj (H, dk, D).
    def _heads_in(w):  # (D, D) -> (H, D, dk)
        return w.reshape(D, H, dk).transpose(1, 0, 2)
    wqkv = jnp.concatenate([_heads_in(params["wq"]), _heads_in(params["wk"]),
                            _heads_in(params["wv"])], axis=0).astype(bf16)
    wo_h = params["wo"].reshape(H, dk, D).astype(bf16)
    w1 = params["w1"].astype(bf16)
    w2 = params["w2"].astype(bf16)

    # Pack the nine (1, D) vectors into one operand.
    vecs = jnp.concatenate(
        [params[n] for n in ("mln_g", "mln_b", "n1_g", "n1_b",
                             "n2_g", "n2_b", "n3_g", "n3_b", "b2")], axis=0)  # (9, D)
    b1 = params["b1"]                                                          # (1, F)

    def _full(shape):
        return pl.BlockSpec(shape, lambda b, _n=len(shape): (0,) * _n)

    out = pl.pallas_call(
        _structure_kernel,
        out_shape=jax.ShapeDtypeStruct((B, L, D), f32),
        grid=(nsteps,),
        in_specs=[
            pl.BlockSpec((bblk, L, D), lambda b: (b, 0, 0)),            # src
            pl.BlockSpec((bblk, H + 1, L, L), lambda b: (b, 0, 0, 0)),  # bias (bf16) + mask plane
            _full((3 * H, D, dk)),                                      # fused Wq|Wk|Wv (bf16)
            _full((H, dk, D)),                                          # Wo per-head (bf16)
            _full((D, F)),                                              # linear1 W (bf16)
            _full((1, F)),                                              # linear1 b
            _full((F, D)),                                              # linear2 W (bf16)
            _full((9, D)),                                              # packed LN gammas/betas + b2
        ],
        out_specs=pl.BlockSpec((bblk, L, D), lambda b: (b, 0, 0)),
        compiler_params=pltpu.CompilerParams(
            dimension_semantics=("parallel",)),   # default VMEM limit is ample here
    )(src.astype(f32), bias_mask, wqkv, wo_h, w1, b1, w2, vecs)
    return out


# ------------------------------ params & JAX reference ----------------------------
def init_params(key, d_model, nhead, dim_feedforward, pairwise_dimension):
    D, H, F, P = d_model, nhead, dim_feedforward, pairwise_dimension
    ks = jax.random.split(key, 20)
    n = lambda k, shp, s=0.1: (s * jax.random.normal(k, shp)).astype(jnp.float32)
    return dict(
        pn_g=1.0 + n(ks[0], (1, P)), pn_b=n(ks[1], (1, P)),
        w_pw=n(ks[2], (H, P)),                       # pairwise2heads.weight (H, P)
        w_dist=n(ks[3], (1, H)),                     # distance2heads.weight.T (1, H)
        wq=n(ks[4], (D, D)), wk=n(ks[5], (D, D)), wv=n(ks[6], (D, D)), wo=n(ks[7], (D, D)),
        mln_g=1.0 + n(ks[8], (1, D)), mln_b=n(ks[9], (1, D)),
        w1=n(ks[10], (D, F)), b1=n(ks[11], (1, F)),
        w2=n(ks[12], (F, D)), b2=n(ks[13], (1, D)),
        n1_g=1.0 + n(ks[14], (1, D)), n1_b=n(ks[15], (1, D)),
        n2_g=1.0 + n(ks[16], (1, D)), n2_b=n(ks[17], (1, D)),
        n3_g=1.0 + n(ks[18], (1, D)), n3_b=n(ks[19], (1, D)),
    )


def reference(src, pairwise, pred_t, src_mask, p):
    """Pure-JAX f32 reference (exact-erf GELU, f32 everywhere, no Pallas)."""
    B, L, D = src.shape
    H = p["w_pw"].shape[0]
    dk = D // H
    pwn = _ln(pairwise, p["pn_g"].reshape(-1), p["pn_b"].reshape(-1), 1e-5)
    pbias = jnp.einsum("blmp,hp->bhlm", pwn, p["w_pw"])
    diff = pred_t[None, :, :] - pred_t[:, None, :]
    dist = jnp.sqrt(jnp.clip(jnp.sum(diff ** 2, -1), 2.0, 37.0 ** 2))
    bias = pbias + dist[None, None, :, :] * p["w_dist"].reshape(1, H, 1, 1)

    q = (src @ p["wq"]).reshape(B, L, H, dk).transpose(0, 2, 1, 3)
    k = (src @ p["wk"]).reshape(B, L, H, dk).transpose(0, 2, 1, 3)
    v = (src @ p["wv"]).reshape(B, L, H, dk).transpose(0, 2, 1, 3)
    s = jnp.einsum("bhqd,bhkd->bhqk", q, k) / math.sqrt(dk) + bias
    m = jnp.where(src_mask == 0, -1.0, src_mask.astype(jnp.float32))
    am = m[:, None, :, None] * m[:, None, None, :]
    s = jnp.where(am == -1.0, jnp.float32(-1e-9), s)
    a = jax.nn.softmax(s, axis=-1)
    o = jnp.einsum("bhqk,bhkd->bhqd", a, v).transpose(0, 2, 1, 3).reshape(B, L, D)
    o = o @ p["wo"]
    src2 = _ln(o + src, p["mln_g"][0], p["mln_b"][0], 1e-6)

    x = _ln(src + src2, p["n1_g"][0], p["n1_b"][0], 1e-5)
    ff = jax.nn.gelu(x @ p["w1"] + p["b1"][0], approximate=False) @ p["w2"] + p["b2"][0]
    x = _ln(x + ff, p["n2_g"][0], p["n2_b"][0], 1e-5)
    x = _ln(x + ff, p["n3_g"][0], p["n3_b"][0], 1e-5)
    return x


# --------------------------------------- main -------------------------------------
if __name__ == "__main__":
    B, L = 2, 16
    D_MODEL, NHEAD, DIM_FF, PAIR_DIM = 32, 4, 64, 16

    key = jax.random.PRNGKey(0)
    k_src, k_pw, k_t, k_p = jax.random.split(key, 4)
    src = jax.random.normal(k_src, (B, L, D_MODEL), jnp.float32)
    pairwise = jax.random.normal(k_pw, (B, L, L, PAIR_DIM), jnp.float32)
    pred_t = 5.0 * jax.random.normal(k_t, (L, 3), jnp.float32)
    src_mask = jnp.tile((jnp.arange(L) < L - 3).astype(jnp.float32)[None, :], (B, 1))
    params = init_params(k_p, D_MODEL, NHEAD, DIM_FF, PAIR_DIM)

    out = simple_structure_module(src, pairwise, pred_t, src_mask, params)
    out = jax.block_until_ready(out)

    ref = reference(src, pairwise, pred_t, src_mask, params)
    assert out.shape == (B, L, D_MODEL)
    assert bool(jnp.all(jnp.isfinite(out)))
    # Per-element abs+rel tolerance (kernel uses bf16 MXU operands, bf16 bias,
    # approx reciprocal and tanh-GELU vs the all-f32 exact reference).
    err = jnp.abs(out - ref)
    tol = 5e-2 + 5e-2 * jnp.abs(ref)
    if not bool(jnp.all(err <= tol)):
        raise AssertionError(
            f"kernel mismatch vs JAX reference: max|diff|={float(jnp.max(err))}")
    print("KERNEL_OK")
</pallas_src>

<mosaic_0001>
module attributes {stable_mosaic.version = 11 : i64} {
  func.func @_structure_kernel(%arg0: i32, %arg1: memref<2x16x32xf32, #tpu.memory_space<vmem>>, %arg2: memref<2x5x16x16xbf16, #tpu.memory_space<vmem>>, %arg3: memref<12x32x8xbf16, #tpu.memory_space<vmem>>, %arg4: memref<4x8x32xbf16, #tpu.memory_space<vmem>>, %arg5: memref<32x64xbf16, #tpu.memory_space<vmem>>, %arg6: memref<1x64xf32, #tpu.memory_space<vmem>>, %arg7: memref<64x32xbf16, #tpu.memory_space<vmem>>, %arg8: memref<9x32xf32, #tpu.memory_space<vmem>>, %arg9: memref<2x16x32xf32, #tpu.memory_space<vmem>>) attributes {dimension_semantics = [#tpu.dimension_semantics<parallel>], iteration_bounds = array<i64: 1>, scalar_prefetch = 0 : i64, scratch_operands = 0 : i64, tpu.core_type = #tpu.core_type<tc>, window_params = [{transform_indices = @transform_0, window_bounds = array<i64: 2, 16, 32>}, {transform_indices = @transform_1, window_bounds = array<i64: 2, 5, 16, 16>}, {pipeline_mode = #tpu.pipeline_mode<synchronous>, transform_indices = @transform_2, window_bounds = array<i64: 12, 32, 8>}, {pipeline_mode = #tpu.pipeline_mode<synchronous>, transform_indices = @transform_3, window_bounds = array<i64: 4, 8, 32>}, {pipeline_mode = #tpu.pipeline_mode<synchronous>, transform_indices = @transform_4, window_bounds = array<i64: 32, 64>}, {pipeline_mode = #tpu.pipeline_mode<synchronous>, transform_indices = @transform_5, window_bounds = array<i64: 1, 64>}, {pipeline_mode = #tpu.pipeline_mode<synchronous>, transform_indices = @transform_6, window_bounds = array<i64: 64, 32>}, {pipeline_mode = #tpu.pipeline_mode<synchronous>, transform_indices = @transform_7, window_bounds = array<i64: 9, 32>}, {transform_indices = @transform_8, window_bounds = array<i64: 2, 16, 32>}]} {
    %c0 = arith.constant 0 : index
    %c0_0 = arith.constant 0 : index
    %c0_1 = arith.constant 0 : index
    %0 = vector.load %arg3[%c0, %c0_0, %c0_1] : memref<12x32x8xbf16, #tpu.memory_space<vmem>>, vector<12x32x8xbf16>
    %c0_2 = arith.constant 0 : index
    %c0_3 = arith.constant 0 : index
    %c0_4 = arith.constant 0 : index
    %1 = vector.load %arg4[%c0_2, %c0_3, %c0_4] : memref<4x8x32xbf16, #tpu.memory_space<vmem>>, vector<4x8x32xbf16>
    %c0_5 = arith.constant 0 : index
    %c0_6 = arith.constant 0 : index
    %2 = vector.load %arg5[%c0_5, %c0_6] : memref<32x64xbf16, #tpu.memory_space<vmem>>, vector<32x64xbf16>
    %c0_7 = arith.constant 0 : index
    %c0_8 = arith.constant 0 : index
    %3 = vector.load %arg7[%c0_7, %c0_8] : memref<64x32xbf16, #tpu.memory_space<vmem>>, vector<64x32xbf16>
    %c0_9 = arith.constant 0 : index
    %c0_10 = arith.constant 0 : index
    %4 = vector.load %arg6[%c0_9, %c0_10] : memref<1x64xf32, #tpu.memory_space<vmem>>, vector<1x64xf32>
    %c0_11 = arith.constant 0 : index
    %c0_12 = arith.constant 0 : index
    %5 = vector.load %arg8[%c0_11, %c0_12] : memref<9x32xf32, #tpu.memory_space<vmem>>, vector<9x32xf32>
    %6 = vector.extract_strided_slice %5 {offsets = [0, 0], sizes = [1, 32], strides = [1, 1]} : vector<9x32xf32> to vector<1x32xf32>
    %7 = vector.extract_strided_slice %5 {offsets = [1, 0], sizes = [1, 32], strides = [1, 1]} : vector<9x32xf32> to vector<1x32xf32>
    %8 = vector.extract_strided_slice %5 {offsets = [2, 0], sizes = [1, 32], strides = [1, 1]} : vector<9x32xf32> to vector<1x32xf32>
    %9 = vector.extract_strided_slice %5 {offsets = [3, 0], sizes = [1, 32], strides = [1, 1]} : vector<9x32xf32> to vector<1x32xf32>
    %10 = vector.extract_strided_slice %5 {offsets = [4, 0], sizes = [1, 32], strides = [1, 1]} : vector<9x32xf32> to vector<1x32xf32>
    %11 = vector.extract_strided_slice %5 {offsets = [5, 0], sizes = [1, 32], strides = [1, 1]} : vector<9x32xf32> to vector<1x32xf32>
    %12 = vector.extract_strided_slice %5 {offsets = [6, 0], sizes = [1, 32], strides = [1, 1]} : vector<9x32xf32> to vector<1x32xf32>
    %13 = vector.extract_strided_slice %5 {offsets = [7, 0], sizes = [1, 32], strides = [1, 1]} : vector<9x32xf32> to vector<1x32xf32>
    %14 = vector.extract_strided_slice %5 {offsets = [8, 0], sizes = [1, 32], strides = [1, 1]} : vector<9x32xf32> to vector<1x32xf32>
    %c0_13 = arith.constant 0 : index
    %c0_14 = arith.constant 0 : index
    %c0_15 = arith.constant 0 : index
    %15 = vector.load %arg1[%c0_13, %c0_14, %c0_15] : memref<2x16x32xf32, #tpu.memory_space<vmem>>, vector<1x16x32xf32>
    %16 = vector.shape_cast %15 : vector<1x16x32xf32> to vector<16x32xf32>
    %17 = arith.truncf %16 : vector<16x32xf32> to vector<16x32xbf16>
    %c0_16 = arith.constant 0 : index
    %c0_17 = arith.constant 0 : index
    %c0_18 = arith.constant 0 : index
    %c0_19 = arith.constant 0 : index
    %18 = vector.load %arg2[%c0_16, %c0_17, %c0_18, %c0_19] : memref<2x5x16x16xbf16, #tpu.memory_space<vmem>>, vector<1x5x16x16xbf16>
    %19 = vector.shape_cast %18 : vector<1x5x16x16xbf16> to vector<5x16x16xbf16>
    %20 = vector.extract_strided_slice %19 {offsets = [0, 0, 0], sizes = [4, 16, 16], strides = [1, 1, 1]} : vector<5x16x16xbf16> to vector<4x16x16xbf16>
    %21 = arith.extf %20 : vector<4x16x16xbf16> to vector<4x16x16xf32>
    %22 = vector.extract_strided_slice %19 {offsets = [4, 0, 0], sizes = [1, 16, 16], strides = [1, 1, 1]} : vector<5x16x16xbf16> to vector<1x16x16xbf16>
    %23 = vector.shape_cast %22 : vector<1x16x16xbf16> to vector<16x16xbf16>
    %cst = arith.constant 5.000000e-01 : bf16
    %24 = vector.broadcast %cst : bf16 to vector<16x16xbf16>
    %25 = arith.cmpf ogt, %23, %24 : vector<16x16xbf16>
    %26 = vector.shape_cast %17 : vector<16x32xbf16> to vector<1x16x32xbf16>
    %27 = vector.shape_cast %26 : vector<1x16x32xbf16> to vector<1x16x32xbf16>
    %28 = vector.broadcast %27 : vector<1x16x32xbf16> to vector<12x16x32xbf16>
    %cst_20 = arith.constant dense<0.000000e+00> : vector<12x16x8xf32>
    %29 = tpu.matmul %28, %0, %cst_20 {dimension_numbers = #tpu.dot_dimension_numbers<[2], [1], [1], [2], [0, 0, 0, 1, 1, 2], [0], [0]>} : vector<12x16x32xbf16>, vector<12x32x8xbf16>, vector<12x16x8xf32> -> vector<12x16x8xf32>
    %30 = vector.extract_strided_slice %29 {offsets = [0, 0, 0], sizes = [4, 16, 8], strides = [1, 1, 1]} : vector<12x16x8xf32> to vector<4x16x8xf32>
    %31 = arith.truncf %30 : vector<4x16x8xf32> to vector<4x16x8xbf16>
    %32 = vector.extract_strided_slice %29 {offsets = [4, 0, 0], sizes = [4, 16, 8], strides = [1, 1, 1]} : vector<12x16x8xf32> to vector<4x16x8xf32>
    %33 = arith.truncf %32 : vector<4x16x8xf32> to vector<4x16x8xbf16>
    %34 = vector.extract_strided_slice %29 {offsets = [8, 0, 0], sizes = [4, 16, 8], strides = [1, 1, 1]} : vector<12x16x8xf32> to vector<4x16x8xf32>
    %35 = arith.truncf %34 : vector<4x16x8xf32> to vector<4x16x8xbf16>
    %cst_21 = arith.constant dense<0.000000e+00> : vector<4x16x16xf32>
    %36 = tpu.matmul %31, %33, %cst_21 {dimension_numbers = #tpu.dot_dimension_numbers<[2], [2], [1], [1], [0, 0, 0, 1, 1, 1], [0], [0]>} : vector<4x16x8xbf16>, vector<4x16x8xbf16>, vector<4x16x16xf32> -> vector<4x16x16xf32>
    %cst_22 = arith.constant 0.353553385 : f32
    %37 = vector.broadcast %cst_22 : f32 to vector<4x16x16xf32>
    %38 = arith.mulf %36, %37 : vector<4x16x16xf32>
    %39 = arith.addf %38, %21 : vector<4x16x16xf32>
    %40 = vector.shape_cast %25 : vector<16x16xi1> to vector<1x16x16xi1>
    %cst_23 = arith.constant -9.99999971E-10 : f32
    %41 = vector.shape_cast %40 : vector<1x16x16xi1> to vector<1x16x16xi1>
    %42 = vector.broadcast %41 : vector<1x16x16xi1> to vector<4x16x16xi1>
    %43 = vector.broadcast %cst_23 : f32 to vector<4x16x16xf32>
    %44 = arith.select %42, %43, %39 : vector<4x16x16xi1>, vector<4x16x16xf32>
    %cst_24 = arith.constant dense<0xFF800000> : vector<4x16xf32>
    %45 = vector.multi_reduction <maximumf>, %44, %cst_24 [2] : vector<4x16x16xf32> to vector<4x16xf32>
    %46 = vector.shape_cast %45 : vector<4x16xf32> to vector<4x16x1xf32>
    %47 = vector.broadcast %46 : vector<4x16x1xf32> to vector<4x16x16xf32>
    %48 = arith.subf %44, %47 : vector<4x16x16xf32>
    %49 = math.exp %48 : vector<4x16x16xf32>
    %cst_25 = arith.constant dense<0.000000e+00> : vector<4x16xf32>
    %50 = vector.multi_reduction <add>, %49, %cst_25 [2] : vector<4x16x16xf32> to vector<4x16xf32>
    %51 = vector.shape_cast %50 : vector<4x16xf32> to vector<4x16x1xf32>
    %52 = tpu.reciprocal %51 {approx = true} : vector<4x16x1xf32> -> vector<4x16x1xf32>
    %53 = vector.broadcast %52 : vector<4x16x1xf32> to vector<4x16x16xf32>
    %54 = arith.mulf %49, %53 : vector<4x16x16xf32>
    %55 = arith.truncf %54 : vector<4x16x16xf32> to vector<4x16x16xbf16>
    %cst_26 = arith.constant dense<0.000000e+00> : vector<4x16x8xf32>
    %56 = tpu.matmul %55, %35, %cst_26 {dimension_numbers = #tpu.dot_dimension_numbers<[2], [1], [1], [2], [0, 0, 0, 1, 1, 2], [0], [0]>} : vector<4x16x16xbf16>, vector<4x16x8xbf16>, vector<4x16x8xf32> -> vector<4x16x8xf32>
    %57 = arith.truncf %56 : vector<4x16x8xf32> to vector<4x16x8xbf16>
    %cst_27 = arith.constant dense<0.000000e+00> : vector<4x16x32xf32>
    %58 = tpu.matmul %57, %1, %cst_27 {dimension_numbers = #tpu.dot_dimension_numbers<[2], [1], [1], [2], [0, 0, 0, 1, 1, 2], [0], [0]>} : vector<4x16x8xbf16>, vector<4x8x32xbf16>, vector<4x16x32xf32> -> vector<4x16x32xf32>
    %cst_28 = arith.constant dense<0.000000e+00> : vector<16x32xf32>
    %59 = vector.multi_reduction <add>, %58, %cst_28 [0] : vector<4x16x32xf32> to vector<16x32xf32>
    %60 = arith.addf %59, %16 : vector<16x32xf32>
    %cst_29 = arith.constant dense<0.000000e+00> : vector<16xf32>
    %61 = vector.multi_reduction <add>, %60, %cst_29 [1] : vector<16x32xf32> to vector<16xf32>
    %62 = vector.shape_cast %61 : vector<16xf32> to vector<16x1xf32>
    %cst_30 = arith.constant 3.200000e+01 : f32
    %63 = vector.broadcast %cst_30 : f32 to vector<16x1xf32>
    %64 = arith.divf %62, %63 : vector<16x1xf32>
    %65 = vector.broadcast %64 : vector<16x1xf32> to vector<16x32xf32>
    %66 = arith.subf %60, %65 : vector<16x32xf32>
    %67 = arith.mulf %66, %66 : vector<16x32xf32>
    %cst_31 = arith.constant dense<0.000000e+00> : vector<16xf32>
    %68 = vector.multi_reduction <add>, %67, %cst_31 [1] : vector<16x32xf32> to vector<16xf32>
    %69 = vector.shape_cast %68 : vector<16xf32> to vector<16x1xf32>
    %cst_32 = arith.constant 3.200000e+01 : f32
    %70 = vector.broadcast %cst_32 : f32 to vector<16x1xf32>
    %71 = arith.divf %69, %70 : vector<16x1xf32>
    %72 = vector.broadcast %64 : vector<16x1xf32> to vector<16x32xf32>
    %73 = arith.subf %60, %72 : vector<16x32xf32>
    %cst_33 = arith.constant 9.99999997E-7 : f32
    %74 = vector.broadcast %cst_33 : f32 to vector<16x1xf32>
    %75 = arith.addf %71, %74 : vector<16x1xf32>
    %76 = math.rsqrt %75 : vector<16x1xf32>
    %77 = vector.broadcast %76 : vector<16x1xf32> to vector<16x32xf32>
    %78 = arith.mulf %73, %77 : vector<16x32xf32>
    %79 = vector.broadcast %6 : vector<1x32xf32> to vector<16x32xf32>
    %80 = arith.mulf %78, %79 : vector<16x32xf32>
    %81 = vector.broadcast %7 : vector<1x32xf32> to vector<16x32xf32>
    %82 = arith.addf %80, %81 : vector<16x32xf32>
    %83 = arith.addf %16, %82 : vector<16x32xf32>
    %cst_34 = arith.constant dense<0.000000e+00> : vector<16xf32>
    %84 = vector.multi_reduction <add>, %83, %cst_34 [1] : vector<16x32xf32> to vector<16xf32>
    %85 = vector.shape_cast %84 : vector<16xf32> to vector<16x1xf32>
    %cst_35 = arith.constant 3.200000e+01 : f32
    %86 = vector.broadcast %cst_35 : f32 to vector<16x1xf32>
    %87 = arith.divf %85, %86 : vector<16x1xf32>
    %88 = vector.broadcast %87 : vector<16x1xf32> to vector<16x32xf32>
    %89 = arith.subf %83, %88 : vector<16x32xf32>
    %90 = arith.mulf %89, %89 : vector<16x32xf32>
    %cst_36 = arith.constant dense<0.000000e+00> : vector<16xf32>
    %91 = vector.multi_reduction <add>, %90, %cst_36 [1] : vector<16x32xf32> to vector<16xf32>
    %92 = vector.shape_cast %91 : vector<16xf32> to vector<16x1xf32>
    %cst_37 = arith.constant 3.200000e+01 : f32
    %93 = vector.broadcast %cst_37 : f32 to vector<16x1xf32>
    %94 = arith.divf %92, %93 : vector<16x1xf32>
    %95 = vector.broadcast %87 : vector<16x1xf32> to vector<16x32xf32>
    %96 = arith.subf %83, %95 : vector<16x32xf32>
    %cst_38 = arith.constant 9.99999974E-6 : f32
    %97 = vector.broadcast %cst_38 : f32 to vector<16x1xf32>
    %98 = arith.addf %94, %97 : vector<16x1xf32>
    %99 = math.rsqrt %98 : vector<16x1xf32>
    %100 = vector.broadcast %99 : vector<16x1xf32> to vector<16x32xf32>
    %101 = arith.mulf %96, %100 : vector<16x32xf32>
    %102 = vector.broadcast %8 : vector<1x32xf32> to vector<16x32xf32>
    %103 = arith.mulf %101, %102 : vector<16x32xf32>
    %104 = vector.broadcast %9 : vector<1x32xf32> to vector<16x32xf32>
    %105 = arith.addf %103, %104 : vector<16x32xf32>
    %106 = arith.truncf %105 : vector<16x32xf32> to vector<16x32xbf16>
    %cst_39 = arith.constant dense<0.000000e+00> : vector<16x64xf32>
    %107 = tpu.matmul %106, %2, %cst_39 {dimension_numbers = #tpu.dot_dimension_numbers<[1], [0], [0], [1], [0, 0, 1, 1], [], []>} : vector<16x32xbf16>, vector<32x64xbf16>, vector<16x64xf32> -> vector<16x64xf32>
    %108 = vector.broadcast %4 : vector<1x64xf32> to vector<16x64xf32>
    %109 = arith.addf %107, %108 : vector<16x64xf32>
    %cst_40 = arith.constant 5.000000e-01 : f32
    %110 = vector.broadcast %cst_40 : f32 to vector<16x64xf32>
    %111 = arith.mulf %110, %109 : vector<16x64xf32>
    %cst_41 = arith.constant 4.471500e-02 : f32
    %112 = vector.broadcast %cst_41 : f32 to vector<16x64xf32>
    %113 = arith.mulf %112, %109 : vector<16x64xf32>
    %114 = arith.mulf %113, %109 : vector<16x64xf32>
    %115 = arith.mulf %114, %109 : vector<16x64xf32>
    %116 = arith.addf %109, %115 : vector<16x64xf32>
    %cst_42 = arith.constant 0.797884583 : f32
    %117 = vector.broadcast %cst_42 : f32 to vector<16x64xf32>
    %118 = arith.mulf %117, %116 : vector<16x64xf32>
    %119 = math.tanh %118 : vector<16x64xf32>
    %cst_43 = arith.constant 1.000000e+00 : f32
    %120 = vector.broadcast %cst_43 : f32 to vector<16x64xf32>
    %121 = arith.addf %120, %119 : vector<16x64xf32>
    %122 = arith.mulf %111, %121 : vector<16x64xf32>
    %123 = arith.truncf %122 : vector<16x64xf32> to vector<16x64xbf16>
    %cst_44 = arith.constant dense<0.000000e+00> : vector<16x32xf32>
    %124 = tpu.matmul %123, %3, %cst_44 {dimension_numbers = #tpu.dot_dimension_numbers<[1], [0], [0], [1], [0, 0, 1, 1], [], []>} : vector<16x64xbf16>, vector<64x32xbf16>, vector<16x32xf32> -> vector<16x32xf32>
    %125 = vector.broadcast %14 : vector<1x32xf32> to vector<16x32xf32>
    %126 = arith.addf %124, %125 : vector<16x32xf32>
    %127 = arith.addf %105, %126 : vector<16x32xf32>
    %cst_45 = arith.constant dense<0.000000e+00> : vector<16xf32>
    %128 = vector.multi_reduction <add>, %127, %cst_45 [1] : vector<16x32xf32> to vector<16xf32>
    %129 = vector.shape_cast %128 : vector<16xf32> to vector<16x1xf32>
    %cst_46 = arith.constant 3.200000e+01 : f32
    %130 = vector.broadcast %cst_46 : f32 to vector<16x1xf32>
    %131 = arith.divf %129, %130 : vector<16x1xf32>
    %132 = vector.broadcast %131 : vector<16x1xf32> to vector<16x32xf32>
    %133 = arith.subf %127, %132 : vector<16x32xf32>
    %134 = arith.mulf %133, %133 : vector<16x32xf32>
    %cst_47 = arith.constant dense<0.000000e+00> : vector<16xf32>
    %135 = vector.multi_reduction <add>, %134, %cst_47 [1] : vector<16x32xf32> to vector<16xf32>
    %136 = vector.shape_cast %135 : vector<16xf32> to vector<16x1xf32>
    %cst_48 = arith.constant 3.200000e+01 : f32
    %137 = vector.broadcast %cst_48 : f32 to vector<16x1xf32>
    %138 = arith.divf %136, %137 : vector<16x1xf32>
    %139 = vector.broadcast %131 : vector<16x1xf32> to vector<16x32xf32>
    %140 = arith.subf %127, %139 : vector<16x32xf32>
    %cst_49 = arith.constant 9.99999974E-6 : f32
    %141 = vector.broadcast %cst_49 : f32 to vector<16x1xf32>
    %142 = arith.addf %138, %141 : vector<16x1xf32>
    %143 = math.rsqrt %142 : vector<16x1xf32>
    %144 = vector.broadcast %143 : vector<16x1xf32> to vector<16x32xf32>
    %145 = arith.mulf %140, %144 : vector<16x32xf32>
    %146 = vector.broadcast %10 : vector<1x32xf32> to vector<16x32xf32>
    %147 = arith.mulf %145, %146 : vector<16x32xf32>
    %148 = vector.broadcast %11 : vector<1x32xf32> to vector<16x32xf32>
    %149 = arith.addf %147, %148 : vector<16x32xf32>
    %150 = arith.addf %149, %126 : vector<16x32xf32>
    %cst_50 = arith.constant dense<0.000000e+00> : vector<16xf32>
    %151 = vector.multi_reduction <add>, %150, %cst_50 [1] : vector<16x32xf32> to vector<16xf32>
    %152 = vector.shape_cast %151 : vector<16xf32> to vector<16x1xf32>
    %cst_51 = arith.constant 3.200000e+01 : f32
    %153 = vector.broadcast %cst_51 : f32 to vector<16x1xf32>
    %154 = arith.divf %152, %153 : vector<16x1xf32>
    %155 = vector.broadcast %154 : vector<16x1xf32> to vector<16x32xf32>
    %156 = arith.subf %150, %155 : vector<16x32xf32>
    %157 = arith.mulf %156, %156 : vector<16x32xf32>
    %cst_52 = arith.constant dense<0.000000e+00> : vector<16xf32>
    %158 = vector.multi_reduction <add>, %157, %cst_52 [1] : vector<16x32xf32> to vector<16xf32>
    %159 = vector.shape_cast %158 : vector<16xf32> to vector<16x1xf32>
    %cst_53 = arith.constant 3.200000e+01 : f32
    %160 = vector.broadcast %cst_53 : f32 to vector<16x1xf32>
    %161 = arith.divf %159, %160 : vector<16x1xf32>
    %162 = vector.broadcast %154 : vector<16x1xf32> to vector<16x32xf32>
    %163 = arith.subf %150, %162 : vector<16x32xf32>
    %cst_54 = arith.constant 9.99999974E-6 : f32
    %164 = vector.broadcast %cst_54 : f32 to vector<16x1xf32>
    %165 = arith.addf %161, %164 : vector<16x1xf32>
    %166 = math.rsqrt %165 : vector<16x1xf32>
    %167 = vector.broadcast %166 : vector<16x1xf32> to vector<16x32xf32>
    %168 = arith.mulf %163, %167 : vector<16x32xf32>
    %169 = vector.broadcast %12 : vector<1x32xf32> to vector<16x32xf32>
    %170 = arith.mulf %168, %169 : vector<16x32xf32>
    %171 = vector.broadcast %13 : vector<1x32xf32> to vector<16x32xf32>
    %172 = arith.addf %170, %171 : vector<16x32xf32>
    %c0_55 = arith.constant 0 : index
    %c0_56 = arith.constant 0 : index
    %c0_57 = arith.constant 0 : index
    %173 = vector.load %arg9[%c0_55, %c0_56, %c0_57] : memref<2x16x32xf32, #tpu.memory_space<vmem>>, vector<1x16x32xf32>
    %174 = vector.shape_cast %173 : vector<1x16x32xf32> to vector<16x32xf32>
    %175 = vector.shape_cast %172 : vector<16x32xf32> to vector<1x16x32xf32>
    tpu.vector_store %arg9[%c0_55, %c0_56, %c0_57], %175 {strides = array<i32>} : memref<2x16x32xf32, #tpu.memory_space<vmem>>, vector<1x16x32xf32>,
    %c1 = arith.constant 1 : index
    %c0_58 = arith.constant 0 : index
    %c0_59 = arith.constant 0 : index
    %176 = vector.load %arg1[%c1, %c0_58, %c0_59] : memref<2x16x32xf32, #tpu.memory_space<vmem>>, vector<1x16x32xf32>
    %177 = vector.shape_cast %176 : vector<1x16x32xf32> to vector<16x32xf32>
    %178 = arith.truncf %177 : vector<16x32xf32> to vector<16x32xbf16>
    %c1_60 = arith.constant 1 : index
    %c0_61 = arith.constant 0 : index
    %c0_62 = arith.constant 0 : index
    %c0_63 = arith.constant 0 : index
    %179 = vector.load %arg2[%c1_60, %c0_61, %c0_62, %c0_63] : memref<2x5x16x16xbf16, #tpu.memory_space<vmem>>, vector<1x5x16x16xbf16>
    %180 = vector.shape_cast %179 : vector<1x5x16x16xbf16> to vector<5x16x16xbf16>
    %181 = vector.extract_strided_slice %180 {offsets = [0, 0, 0], sizes = [4, 16, 16], strides = [1, 1, 1]} : vector<5x16x16xbf16> to vector<4x16x16xbf16>
    %182 = arith.extf %181 : vector<4x16x16xbf16> to vector<4x16x16xf32>
    %183 = vector.extract_strided_slice %180 {offsets = [4, 0, 0], sizes = [1, 16, 16], strides = [1, 1, 1]} : vector<5x16x16xbf16> to vector<1x16x16xbf16>
    %184 = vector.shape_cast %183 : vector<1x16x16xbf16> to vector<16x16xbf16>
    %cst_64 = arith.constant 5.000000e-01 : bf16
    %185 = vector.broadcast %cst_64 : bf16 to vector<16x16xbf16>
    %186 = arith.cmpf ogt, %184, %185 : vector<16x16xbf16>
    %187 = vector.shape_cast %178 : vector<16x32xbf16> to vector<1x16x32xbf16>
    %188 = vector.shape_cast %187 : vector<1x16x32xbf16> to vector<1x16x32xbf16>
    %189 = vector.broadcast %188 : vector<1x16x32xbf16> to vector<12x16x32xbf16>
    %cst_65 = arith.constant dense<0.000000e+00> : vector<12x16x8xf32>
    %190 = tpu.matmul %189, %0, %cst_65 {dimension_numbers = #tpu.dot_dimension_numbers<[2], [1], [1], [2], [0, 0, 0, 1, 1, 2], [0], [0]>} : vector<12x16x32xbf16>, vector<12x32x8xbf16>, vector<12x16x8xf32> -> vector<12x16x8xf32>
    %191 = vector.extract_strided_slice %190 {offsets = [0, 0, 0], sizes = [4, 16, 8], strides = [1, 1, 1]} : vector<12x16x8xf32> to vector<4x16x8xf32>
    %192 = arith.truncf %191 : vector<4x16x8xf32> to vector<4x16x8xbf16>
    %193 = vector.extract_strided_slice %190 {offsets = [4, 0, 0], sizes = [4, 16, 8], strides = [1, 1, 1]} : vector<12x16x8xf32> to vector<4x16x8xf32>
    %194 = arith.truncf %193 : vector<4x16x8xf32> to vector<4x16x8xbf16>
    %195 = vector.extract_strided_slice %190 {offsets = [8, 0, 0], sizes = [4, 16, 8], strides = [1, 1, 1]} : vector<12x16x8xf32> to vector<4x16x8xf32>
    %196 = arith.truncf %195 : vector<4x16x8xf32> to vector<4x16x8xbf16>
    %cst_66 = arith.constant dense<0.000000e+00> : vector<4x16x16xf32>
    %197 = tpu.matmul %192, %194, %cst_66 {dimension_numbers = #tpu.dot_dimension_numbers<[2], [2], [1], [1], [0, 0, 0, 1, 1, 1], [0], [0]>} : vector<4x16x8xbf16>, vector<4x16x8xbf16>, vector<4x16x16xf32> -> vector<4x16x16xf32>
    %cst_67 = arith.constant 0.353553385 : f32
    %198 = vector.broadcast %cst_67 : f32 to vector<4x16x16xf32>
    %199 = arith.mulf %197, %198 : vector<4x16x16xf32>
    %200 = arith.addf %199, %182 : vector<4x16x16xf32>
    %201 = vector.shape_cast %186 : vector<16x16xi1> to vector<1x16x16xi1>
    %cst_68 = arith.constant -9.99999971E-10 : f32
    %202 = vector.shape_cast %201 : vector<1x16x16xi1> to vector<1x16x16xi1>
    %203 = vector.broadcast %202 : vector<1x16x16xi1> to vector<4x16x16xi1>
    %204 = vector.broadcast %cst_68 : f32 to vector<4x16x16xf32>
    %205 = arith.select %203, %204, %200 : vector<4x16x16xi1>, vector<4x16x16xf32>
    %cst_69 = arith.constant dense<0xFF800000> : vector<4x16xf32>
    %206 = vector.multi_reduction <maximumf>, %205, %cst_69 [2] : vector<4x16x16xf32> to vector<4x16xf32>
    %207 = vector.shape_cast %206 : vector<4x16xf32> to vector<4x16x1xf32>
    %208 = vector.broadcast %207 : vector<4x16x1xf32> to vector<4x16x16xf32>
    %209 = arith.subf %205, %208 : vector<4x16x16xf32>
    %210 = math.exp %209 : vector<4x16x16xf32>
    %cst_70 = arith.constant dense<0.000000e+00> : vector<4x16xf32>
    %211 = vector.multi_reduction <add>, %210, %cst_70 [2] : vector<4x16x16xf32> to vector<4x16xf32>
    %212 = vector.shape_cast %211 : vector<4x16xf32> to vector<4x16x1xf32>
    %213 = tpu.reciprocal %212 {approx = true} : vector<4x16x1xf32> -> vector<4x16x1xf32>
    %214 = vector.broadcast %213 : vector<4x16x1xf32> to vector<4x16x16xf32>
    %215 = arith.mulf %210, %214 : vector<4x16x16xf32>
    %216 = arith.truncf %215 : vector<4x16x16xf32> to vector<4x16x16xbf16>
    %cst_71 = arith.constant dense<0.000000e+00> : vector<4x16x8xf32>
    %217 = tpu.matmul %216, %196, %cst_71 {dimension_numbers = #tpu.dot_dimension_numbers<[2], [1], [1], [2], [0, 0, 0, 1, 1, 2], [0], [0]>} : vector<4x16x16xbf16>, vector<4x16x8xbf16>, vector<4x16x8xf32> -> vector<4x16x8xf32>
    %218 = arith.truncf %217 : vector<4x16x8xf32> to vector<4x16x8xbf16>
    %cst_72 = arith.constant dense<0.000000e+00> : vector<4x16x32xf32>
    %219 = tpu.matmul %218, %1, %cst_72 {dimension_numbers = #tpu.dot_dimension_numbers<[2], [1], [1], [2], [0, 0, 0, 1, 1, 2], [0], [0]>} : vector<4x16x8xbf16>, vector<4x8x32xbf16>, vector<4x16x32xf32> -> vector<4x16x32xf32>
    %cst_73 = arith.constant dense<0.000000e+00> : vector<16x32xf32>
    %220 = vector.multi_reduction <add>, %219, %cst_73 [0] : vector<4x16x32xf32> to vector<16x32xf32>
    %221 = arith.addf %220, %177 : vector<16x32xf32>
    %cst_74 = arith.constant dense<0.000000e+00> : vector<16xf32>
    %222 = vector.multi_reduction <add>, %221, %cst_74 [1] : vector<16x32xf32> to vector<16xf32>
    %223 = vector.shape_cast %222 : vector<16xf32> to vector<16x1xf32>
    %cst_75 = arith.constant 3.200000e+01 : f32
    %224 = vector.broadcast %cst_75 : f32 to vector<16x1xf32>
    %225 = arith.divf %223, %224 : vector<16x1xf32>
    %226 = vector.broadcast %225 : vector<16x1xf32> to vector<16x32xf32>
    %227 = arith.subf %221, %226 : vector<16x32xf32>
    %228 = arith.mulf %227, %227 : vector<16x32xf32>
    %cst_76 = arith.constant dense<0.000000e+00> : vector<16xf32>
    %229 = vector.multi_reduction <add>, %228, %cst_76 [1] : vector<16x32xf32> to vector<16xf32>
    %230 = vector.shape_cast %229 : vector<16xf32> to vector<16x1xf32>
    %cst_77 = arith.constant 3.200000e+01 : f32
    %231 = vector.broadcast %cst_77 : f32 to vector<16x1xf32>
    %232 = arith.divf %230, %231 : vector<16x1xf32>
    %233 = vector.broadcast %225 : vector<16x1xf32> to vector<16x32xf32>
    %234 = arith.subf %221, %233 : vector<16x32xf32>
    %cst_78 = arith.constant 9.99999997E-7 : f32
    %235 = vector.broadcast %cst_78 : f32 to vector<16x1xf32>
    %236 = arith.addf %232, %235 : vector<16x1xf32>
    %237 = math.rsqrt %236 : vector<16x1xf32>
    %238 = vector.broadcast %237 : vector<16x1xf32> to vector<16x32xf32>
    %239 = arith.mulf %234, %238 : vector<16x32xf32>
    %240 = vector.broadcast %6 : vector<1x32xf32> to vector<16x32xf32>
    %241 = arith.mulf %239, %240 : vector<16x32xf32>
    %242 = vector.broadcast %7 : vector<1x32xf32> to vector<16x32xf32>
    %243 = arith.addf %241, %242 : vector<16x32xf32>
    %244 = arith.addf %177, %243 : vector<16x32xf32>
    %cst_79 = arith.constant dense<0.000000e+00> : vector<16xf32>
    %245 = vector.multi_reduction <add>, %244, %cst_79 [1] : vector<16x32xf32> to vector<16xf32>
    %246 = vector.shape_cast %245 : vector<16xf32> to vector<16x1xf32>
    %cst_80 = arith.constant 3.200000e+01 : f32
    %247 = vector.broadcast %cst_80 : f32 to vector<16x1xf32>
    %248 = arith.divf %246, %247 : vector<16x1xf32>
    %249 = vector.broadcast %248 : vector<16x1xf32> to vector<16x32xf32>
    %250 = arith.subf %244, %249 : vector<16x32xf32>
    %251 = arith.mulf %250, %250 : vector<16x32xf32>
    %cst_81 = arith.constant dense<0.000000e+00> : vector<16xf32>
    %252 = vector.multi_reduction <add>, %251, %cst_81 [1] : vector<16x32xf32> to vector<16xf32>
    %253 = vector.shape_cast %252 : vector<16xf32> to vector<16x1xf32>
    %cst_82 = arith.constant 3.200000e+01 : f32
    %254 = vector.broadcast %cst_82 : f32 to vector<16x1xf32>
    %255 = arith.divf %253, %254 : vector<16x1xf32>
    %256 = vector.broadcast %248 : vector<16x1xf32> to vector<16x32xf32>
    %257 = arith.subf %244, %256 : vector<16x32xf32>
    %cst_83 = arith.constant 9.99999974E-6 : f32
    %258 = vector.broadcast %cst_83 : f32 to vector<16x1xf32>
    %259 = arith.addf %255, %258 : vector<16x1xf32>
    %260 = math.rsqrt %259 : vector<16x1xf32>
    %261 = vector.broadcast %260 : vector<16x1xf32> to vector<16x32xf32>
    %262 = arith.mulf %257, %261 : vector<16x32xf32>
    %263 = vector.broadcast %8 : vector<1x32xf32> to vector<16x32xf32>
    %264 = arith.mulf %262, %263 : vector<16x32xf32>
    %265 = vector.broadcast %9 : vector<1x32xf32> to vector<16x32xf32>
    %266 = arith.addf %264, %265 : vector<16x32xf32>
    %267 = arith.truncf %266 : vector<16x32xf32> to vector<16x32xbf16>
    %cst_84 = arith.constant dense<0.000000e+00> : vector<16x64xf32>
    %268 = tpu.matmul %267, %2, %cst_84 {dimension_numbers = #tpu.dot_dimension_numbers<[1], [0], [0], [1], [0, 0, 1, 1], [], []>} : vector<16x32xbf16>, vector<32x64xbf16>, vector<16x64xf32> -> vector<16x64xf32>
    %269 = vector.broadcast %4 : vector<1x64xf32> to vector<16x64xf32>
    %270 = arith.addf %268, %269 : vector<16x64xf32>
    %cst_85 = arith.constant 5.000000e-01 : f32
    %271 = vector.broadcast %cst_85 : f32 to vector<16x64xf32>
    %272 = arith.mulf %271, %270 : vector<16x64xf32>
    %cst_86 = arith.constant 4.471500e-02 : f32
    %273 = vector.broadcast %cst_86 : f32 to vector<16x64xf32>
    %274 = arith.mulf %273, %270 : vector<16x64xf32>
    %275 = arith.mulf %274, %270 : vector<16x64xf32>
    %276 = arith.mulf %275, %270 : vector<16x64xf32>
    %277 = arith.addf %270, %276 : vector<16x64xf32>
    %cst_87 = arith.constant 0.797884583 : f32
    %278 = vector.broadcast %cst_87 : f32 to vector<16x64xf32>
    %279 = arith.mulf %278, %277 : vector<16x64xf32>
    %280 = math.tanh %279 : vector<16x64xf32>
    %cst_88 = arith.constant 1.000000e+00 : f32
    %281 = vector.broadcast %cst_88 : f32 to vector<16x64xf32>
    %282 = arith.addf %281, %280 : vector<16x64xf32>
    %283 = arith.mulf %272, %282 : vector<16x64xf32>
    %284 = arith.truncf %283 : vector<16x64xf32> to vector<16x64xbf16>
    %cst_89 = arith.constant dense<0.000000e+00> : vector<16x32xf32>
    %285 = tpu.matmul %284, %3, %cst_89 {dimension_numbers = #tpu.dot_dimension_numbers<[1], [0], [0], [1], [0, 0, 1, 1], [], []>} : vector<16x64xbf16>, vector<64x32xbf16>, vector<16x32xf32> -> vector<16x32xf32>
    %286 = vector.broadcast %14 : vector<1x32xf32> to vector<16x32xf32>
    %287 = arith.addf %285, %286 : vector<16x32xf32>
    %288 = arith.addf %266, %287 : vector<16x32xf32>
    %cst_90 = arith.constant dense<0.000000e+00> : vector<16xf32>
    %289 = vector.multi_reduction <add>, %288, %cst_90 [1] : vector<16x32xf32> to vector<16xf32>
    %290 = vector.shape_cast %289 : vector<16xf32> to vector<16x1xf32>
    %cst_91 = arith.constant 3.200000e+01 : f32
    %291 = vector.broadcast %cst_91 : f32 to vector<16x1xf32>
    %292 = arith.divf %290, %291 : vector<16x1xf32>
    %293 = vector.broadcast %292 : vector<16x1xf32> to vector<16x32xf32>
    %294 = arith.subf %288, %293 : vector<16x32xf32>
    %295 = arith.mulf %294, %294 : vector<16x32xf32>
    %cst_92 = arith.constant dense<0.000000e+00> : vector<16xf32>
    %296 = vector.multi_reduction <add>, %295, %cst_92 [1] : vector<16x32xf32> to vector<16xf32>
    %297 = vector.shape_cast %296 : vector<16xf32> to vector<16x1xf32>
    %cst_93 = arith.constant 3.200000e+01 : f32
    %298 = vector.broadcast %cst_93 : f32 to vector<16x1xf32>
    %299 = arith.divf %297, %298 : vector<16x1xf32>
    %300 = vector.broadcast %292 : vector<16x1xf32> to vector<16x32xf32>
    %301 = arith.subf %288, %300 : vector<16x32xf32>
    %cst_94 = arith.constant 9.99999974E-6 : f32
    %302 = vector.broadcast %cst_94 : f32 to vector<16x1xf32>
    %303 = arith.addf %299, %302 : vector<16x1xf32>
    %304 = math.rsqrt %303 : vector<16x1xf32>
    %305 = vector.broadcast %304 : vector<16x1xf32> to vector<16x32xf32>
    %306 = arith.mulf %301, %305 : vector<16x32xf32>
    %307 = vector.broadcast %10 : vector<1x32xf32> to vector<16x32xf32>
    %308 = arith.mulf %306, %307 : vector<16x32xf32>
    %309 = vector.broadcast %11 : vector<1x32xf32> to vector<16x32xf32>
    %310 = arith.addf %308, %309 : vector<16x32xf32>
    %311 = arith.addf %310, %287 : vector<16x32xf32>
    %cst_95 = arith.constant dense<0.000000e+00> : vector<16xf32>
    %312 = vector.multi_reduction <add>, %311, %cst_95 [1] : vector<16x32xf32> to vector<16xf32>
    %313 = vector.shape_cast %312 : vector<16xf32> to vector<16x1xf32>
    %cst_96 = arith.constant 3.200000e+01 : f32
    %314 = vector.broadcast %cst_96 : f32 to vector<16x1xf32>
    %315 = arith.divf %313, %314 : vector<16x1xf32>
    %316 = vector.broadcast %315 : vector<16x1xf32> to vector<16x32xf32>
    %317 = arith.subf %311, %316 : vector<16x32xf32>
    %318 = arith.mulf %317, %317 : vector<16x32xf32>
    %cst_97 = arith.constant dense<0.000000e+00> : vector<16xf32>
    %319 = vector.multi_reduction <add>, %318, %cst_97 [1] : vector<16x32xf32> to vector<16xf32>
    %320 = vector.shape_cast %319 : vector<16xf32> to vector<16x1xf32>
    %cst_98 = arith.constant 3.200000e+01 : f32
    %321 = vector.broadcast %cst_98 : f32 to vector<16x1xf32>
    %322 = arith.divf %320, %321 : vector<16x1xf32>
    %323 = vector.broadcast %315 : vector<16x1xf32> to vector<16x32xf32>
    %324 = arith.subf %311, %323 : vector<16x32xf32>
    %cst_99 = arith.constant 9.99999974E-6 : f32
    %325 = vector.broadcast %cst_99 : f32 to vector<16x1xf32>
    %326 = arith.addf %322, %325 : vector<16x1xf32>
    %327 = math.rsqrt %326 : vector<16x1xf32>
    %328 = vector.broadcast %327 : vector<16x1xf32> to vector<16x32xf32>
    %329 = arith.mulf %324, %328 : vector<16x32xf32>
    %330 = vector.broadcast %12 : vector<1x32xf32> to vector<16x32xf32>
    %331 = arith.mulf %329, %330 : vector<16x32xf32>
    %332 = vector.broadcast %13 : vector<1x32xf32> to vector<16x32xf32>
    %333 = arith.addf %331, %332 : vector<16x32xf32>
    %c1_100 = arith.constant 1 : index
    %c0_101 = arith.constant 0 : index
    %c0_102 = arith.constant 0 : index
    %334 = vector.load %arg9[%c1_100, %c0_101, %c0_102] : memref<2x16x32xf32, #tpu.memory_space<vmem>>, vector<1x16x32xf32>
    %335 = vector.shape_cast %334 : vector<1x16x32xf32> to vector<16x32xf32>
    %336 = vector.shape_cast %333 : vector<16x32xf32> to vector<1x16x32xf32>
    tpu.vector_store %arg9[%c1_100, %c0_101, %c0_102], %336 {strides = array<i32>} : memref<2x16x32xf32, #tpu.memory_space<vmem>>, vector<1x16x32xf32>,
    return
  }
  func.func @transform_0(%arg0: i32) -> (i32, i32, i32) {
    %c0_i32 = arith.constant 0 : i32
    %c0_i32_0 = arith.constant 0 : i32
    %c0_i32_1 = arith.constant 0 : i32
    return %arg0, %c0_i32, %c0_i32_0 : i32, i32, i32
  }
  func.func @transform_1(%arg0: i32) -> (i32, i32, i32, i32) {
    %c0_i32 = arith.constant 0 : i32
    %c0_i32_0 = arith.constant 0 : i32
    %c0_i32_1 = arith.constant 0 : i32
    %c0_i32_2 = arith.constant 0 : i32
    return %arg0, %c0_i32, %c0_i32_0, %c0_i32_1 : i32, i32, i32, i32
  }
  func.func @transform_2(%arg0: i32) -> (i32, i32, i32) {
    %c0_i32 = arith.constant 0 : i32
    %c0_i32_0 = arith.constant 0 : i32
    %c0_i32_1 = arith.constant 0 : i32
    %c0_i32_2 = arith.constant 0 : i32
    return %c0_i32, %c0_i32_0, %c0_i32_1 : i32, i32, i32
  }
  func.func @transform_3(%arg0: i32) -> (i32, i32, i32) {
    %c0_i32 = arith.constant 0 : i32
    %c0_i32_0 = arith.constant 0 : i32
    %c0_i32_1 = arith.constant 0 : i32
    %c0_i32_2 = arith.constant 0 : i32
    return %c0_i32, %c0_i32_0, %c0_i32_1 : i32, i32, i32
  }
  func.func @transform_4(%arg0: i32) -> (i32, i32) {
    %c0_i32 = arith.constant 0 : i32
    %c0_i32_0 = arith.constant 0 : i32
    %c0_i32_1 = arith.constant 0 : i32
    return %c0_i32, %c0_i32_0 : i32, i32
  }
  func.func @transform_5(%arg0: i32) -> (i32, i32) {
    %c0_i32 = arith.constant 0 : i32
    %c0_i32_0 = arith.constant 0 : i32
    %c0_i32_1 = arith.constant 0 : i32
    return %c0_i32, %c0_i32_0 : i32, i32
  }
  func.func @transform_6(%arg0: i32) -> (i32, i32) {
    %c0_i32 = arith.constant 0 : i32
    %c0_i32_0 = arith.constant 0 : i32
    %c0_i32_1 = arith.constant 0 : i32
    return %c0_i32, %c0_i32_0 : i32, i32
  }
  func.func @transform_7(%arg0: i32) -> (i32, i32) {
    %c0_i32 = arith.constant 0 : i32
    %c0_i32_0 = arith.constant 0 : i32
    %c0_i32_1 = arith.constant 0 : i32
    return %c0_i32, %c0_i32_0 : i32, i32
  }
  func.func @transform_8(%arg0: i32) -> (i32, i32, i32) {
    %c0_i32 = arith.constant 0 : i32
    %c0_i32_0 = arith.constant 0 : i32
    %c0_i32_1 = arith.constant 0 : i32
    return %arg0, %c0_i32, %c0_i32_0 : i32, i32, i32
  }
}

</mosaic_0001>

<bundles_post_ra>
// kernel: tpu_custom_call.1
= control target key start
LH: loop header
LB: loop body
LE: loop exit
PB: predicated region body
PF: predicated region fallthrough
CT: control target
= control target key end

     0   :  { %v4096_v1 = vmov 0.0   ;;  %vm4097_vm0 = vmmov 0   ;;  %vm136_vm1 = vcmask 261120   ;;  %s5015_s0 = inlined_call_operand.vmem [shape: f32[2,16,32], index: 0, kind: input, shape index: {}]   ;;  %s5016_s1 = inlined_call_operand.vmem [shape: bf16[2,5,16,16], index: 1, kind: input, shape index: {}]   ;;  %s5017_s2 = inlined_call_operand.vmem [shape: bf16[12,32,8], index: 2, kind: input, shape index: {}]   ;;  %s5018_s3 = inlined_call_operand.vmem [shape: bf16[4,8,32], index: 3, kind: input, shape index: {}]   ;;  %s5019_s4 = inlined_call_operand.vmem [shape: bf16[32,64], index: 4, kind: input, shape index: {}]   ;;  %s5020_s5 = inlined_call_operand.vmem [shape: f32[1,64], index: 5, kind: input, shape index: {}]   ;;  %s5021_s6 = inlined_call_operand.vmem [shape: bf16[64,32], index: 6, kind: input, shape index: {}]   ;;  %s5022_s7 = inlined_call_operand.vmem [shape: f32[9,32], index: 7, kind: input, shape index: {}]   ;;  %s5023_s8 = inlined_call_operand.hbm [shape: f32[2,16,32], index: 8, kind: output, shape index: {}]  }
   0x1   :  { %v3917_v0 = vld [vmem:[%s5017_s2] sm:$0xff]   ;;  %3535 = vmatprep.subr.bf16.mxu1 %v4096_v1  ;;  %3551 = vmatprep.subr.bf16.mxu0 %v4096_v1  ;;  %v3919_v3 = vld [vmem:[%s5017_s2 + $0x8] sm:$0xff]   ;;  %v3921_v8 = vld [vmem:[%s5017_s2 + $0x10] sm:$0xff]  }
   0x2   :  { %v3918_v2 = vld [vmem:[%s5017_s2 + $0x20] sm:$0xff]   ;;  %3536 = vmatpush3.bf16.msra.mxu1 %v3917_v0  ;;  %3539 = vmatprep.mubr.msk.bf16.mxu1 %vm4097_vm0, %v4096_v1  ;;  %v3920_v4 = vld [vmem:[%s5017_s2 + $0x28] sm:$0xff]   ;;  %v3923_v10 = vld [vmem:[%s5017_s2 + $0x18] sm:$0xff]  }
   0x3   :  { %3552 = vmatpush3.bf16.msra.mxu0 %v3918_v2  ;;  %3537 = vmatprep.subr.bf16.mxu1 %v4096_v1  ;;  %v4170_v5 = vld [vmem:[%s5015_s0] sm:$0xff]  ;;  %v4175_v6 = vld [vmem:[%s5015_s0 + $0x8] sm:$0xff]  ;;  %v3925_v12 = vld [vmem:[%s5017_s2 + $0x30] sm:$0xff]  }
   0x4   :  { %3553 = vmatprep.subr.bf16.mxu0 %v4096_v1  ;;  %3555 = vmatprep.mubr.msk.bf16.mxu0 %vm4097_vm0, %v4096_v1  ;;  %v4179_v7 = vpack.c.bf16 %v4175_v6, %v4170_v5  ;;  %v3922_v9 = vld [vmem:[%s5017_s2 + $0x40] sm:$0xff]   ;;  %v3924_v11 = vld [vmem:[%s5017_s2 + $0x48] sm:$0xff]   ;;  %v3927_v14 = vld [vmem:[%s5017_s2 + $0x38] sm:$0xff]  }
   0x5   :  { %v3926_v13 = vld [vmem:[%s5017_s2 + $0x60] sm:$0xff]   ;;  %v3928_v15 = vld [vmem:[%s5017_s2 + $0x68] sm:$0xff]   ;;  %v3929_v16 = vld [vmem:[%s5017_s2 + $0x50] sm:$0xff]  }
   0x6   :  { %3538 = vmatpush3.bf16.msra.mxu1 %v3919_v3  ;;  %v3933_v17 = vld [vmem:[%s5017_s2 + $0x80] sm:$0xff]   ;;  %v3930_v18 = vld [vmem:[%s5017_s2 + $0x58] sm:$0xff]  }
   0x7   :  { %3554 = vmatpush3.bf16.msra.mxu0 %v3920_v4  ;;  %3543 = vmatprep.subr.bf16.mxu1 %v4096_v1 }
   0x8   :  { %3567 = vmatprep.subr.bf16.mxu0 %v4096_v1 }
   0x9   :  { %3540 = vmatmul.mubr.msk.bf16.vlgmr.msra.gmra.mrb[0].mxu1 %vm136_vm1, %v4179_v7 }
   0xa   :  { %3556 = vmatmul.mubr.msk.bf16.vlgmr.msra.gmra.mrb[0].mxu0 %vm136_vm1, %v4179_v7  ;;  %3544 = vmatpush3.bf16.msra.mxu1 %v3921_v8 }
   0xb   :  { %3568 = vmatpush3.bf16.msra.mxu0 %v3922_v9  ;;  %3545 = vmatprep.subr.bf16.mxu1 %v4096_v1 }
   0xc   :  { %3569 = vmatprep.subr.bf16.mxu0 %v4096_v1  ;;  %3547 = vmatprep.mubr.msk.bf16.mxu1 %vm4097_vm0, %v4096_v1 }
   0xd   :  { %3571 = vmatprep.mubr.msk.bf16.mxu0 %vm4097_vm0, %v4096_v1 }
   0xe   :  { %3546 = vmatpush3.bf16.msra.mxu1 %v3923_v10 }
   0xf   :  { %3570 = vmatpush3.bf16.msra.mxu0 %v3924_v11  ;;  %3559 = vmatprep.subr.bf16.mxu1 %v4096_v1 }
  0x10   :  { %3583 = vmatprep.subr.bf16.mxu0 %v4096_v1 }
  0x11   :  { %3548 = vmatmul.mubr.msk.bf16.vlgmr.msra.gmra.mrb[4].mxu1 %vm136_vm1, %v4179_v7 }
  0x12   :  { %3572 = vmatmul.mubr.msk.bf16.vlgmr.msra.gmra.mrb[4].mxu0 %vm136_vm1, %v4179_v7  ;;  %3560 = vmatpush3.bf16.msra.mxu1 %v3925_v12 }
  0x13   :  { %3584 = vmatpush3.bf16.msra.mxu0 %v3926_v13  ;;  %3561 = vmatprep.subr.bf16.mxu1 %v4096_v1 }
  0x14   :  { %3585 = vmatprep.subr.bf16.mxu0 %v4096_v1  ;;  %3563 = vmatprep.mubr.msk.bf16.mxu1 %vm4097_vm0, %v4096_v1 }
  0x15   :  { %3587 = vmatprep.mubr.msk.bf16.mxu0 %vm4097_vm0, %v4096_v1 }
  0x16   :  { %3562 = vmatpush3.bf16.msra.mxu1 %v3927_v14 }
  0x17   :  { %3586 = vmatpush3.bf16.msra.mxu0 %v3928_v15  ;;  %3575 = vmatprep.subr.bf16.mxu1 %v4096_v1 }
  0x18   :  { %3599 = vmatprep.subr.bf16.mxu0 %v4096_v1 }
  0x19   :  { %3564 = vmatmul.mubr.msk.bf16.vlgmr.msra.gmra.mrb[8].mxu1 %vm136_vm1, %v4179_v7 }
  0x1a   :  { %3588 = vmatmul.mubr.msk.bf16.vlgmr.msra.gmra.mrb[8].mxu0 %vm136_vm1, %v4179_v7  ;;  %3576 = vmatpush3.bf16.msra.mxu1 %v3929_v16 }
  0x1b   :  { %13 = vsyncpa [#allocation3], 0  ;;  %3577 = vmatprep.subr.bf16.mxu1 %v4096_v1  ;;  %3579 = vmatprep.mubr.msk.bf16.mxu1 %vm4097_vm0, %v4096_v1  ;;  %v3934_v19 = vld [vmem:[%s5017_s2 + $0x88] sm:$0xff]   ;;  %v4256_v20 = vld [vmem:[%s5017_s2 + $0x70] sm:$0xff]   ;;  %vm776_vm2 = vcmask 64512   ;;  %vm999_vm6 = vcmask 130048  }
  0x1c   :  { %3600 = vmatpush3.bf16.msra.mxu0 %v3933_v17  ;;  %3603 = vmatprep.mubr.msk.bf16.mxu0 %vm4097_vm0, %v4096_v1  ;;  %v4266_v21 = vld [vmem:[%s5017_s2 + $0x78] sm:$0xff]   ;;  %v3935_v22 = vld [vmem:[%s5017_s2 + $0xa0] sm:$0xff]   ;;  %v3936_v23 = vld [vmem:[%s5017_s2 + $0xa8] sm:$0xff]   ;;  %vm1275_vm8 = vcmask 1043456   ;;  %vm1666_vm9 = vcmask 523264  }
  0x1d   :  { %3601 = vmatprep.subr.bf16.mxu0 %v4096_v1  ;;  %v4291_v24 = vld [vmem:[%s5017_s2 + $0x90] sm:$0xff]   ;;  %v4301_v25 = vld [vmem:[%s5017_s2 + $0x98] sm:$0xff]  }
  0x1e   :  { %3578 = vmatpush3.bf16.msra.mxu1 %v3930_v18  ;;  %v4312_v26 = vld [vmem:[%s5017_s2 + $0xb0] sm:$0xff]   ;;  %v4321_v27 = vld [vmem:[%s5017_s2 + $0xb8] sm:$0xff]  }
  0x1f   :  { %3591 = vmatprep.subr.bf16.mxu1 %v4096_v1 }
  0x20   :  { %3602 = vmatpush3.bf16.msra.mxu0 %v3934_v19 }
  0x21   :  { %3580 = vmatmul.mubr.msk.bf16.vlgmr.msra.gmra.mrb[12].mxu1 %vm136_vm1, %v4179_v7  ;;  %3615 = vmatprep.subr.bf16.mxu0 %v4096_v1 }
  0x22   :  { %3592 = vmatpush3.bf16.msra.mxu1 %v4256_v20  ;;  %3595 = vmatprep.mubr.msk.bf16.mxu1 %vm4097_vm0, %v4096_v1 }
  0x23   :  { %3593 = vmatprep.subr.bf16.mxu1 %v4096_v1  ;;  %3604 = vmatmul.mubr.msk.bf16.vlgmr.msra.gmra.mrb[12].mxu0 %vm136_vm1, %v4179_v7 }
  0x24   :  { %3619 = vmatprep.mubr.msk.bf16.mxu0 %vm4097_vm0, %v4096_v1  ;;  %3616 = vmatpush3.bf16.msra.mxu0 %v3935_v22 }
  0x25   :  { %3617 = vmatprep.subr.bf16.mxu0 %v4096_v1 }
  0x26   :  { %3594 = vmatpush3.bf16.msra.mxu1 %v4266_v21 }
  0x27   :  { %3607 = vmatprep.subr.bf16.mxu1 %v4096_v1 }
  0x28   :  { %3618 = vmatpush3.bf16.msra.mxu0 %v3936_v23 }
  0x29   :  { %3596 = vmatmul.mubr.msk.bf16.vlgmr.msra.gmra.mrb[16].mxu1 %vm136_vm1, %v4179_v7  ;;  %3631 = vmatprep.subr.bf16.mxu0 %v4096_v1 }
  0x2a   :  { %3611 = vmatprep.mubr.msk.bf16.mxu1 %vm4097_vm0, %v4096_v1  ;;  %3608 = vmatpush3.bf16.msra.mxu1 %v4291_v24 }
  0x2b   :  { %3609 = vmatprep.subr.bf16.mxu1 %v4096_v1  ;;  %3620 = vmatmul.mubr.msk.bf16.vlgmr.msra.gmra.mrb[16].mxu0 %vm136_vm1, %v4179_v7 }
  0x2c   :  { %3633 = vmatprep.mubr.msk.bf16.mxu0 %vm4097_vm0, %v4096_v1 }
  0x2e   :  { %3610 = vmatpush3.bf16.msra.mxu1 %v4301_v25 }
  0x2f   :  { %3623 = vmatprep.subr.bf16.mxu1 %v4096_v1 }
  0x31   :  { %3612 = vmatmul.mubr.msk.bf16.vlgmr.msra.gmra.mrb[20].mxu1 %vm136_vm1, %v4179_v7 }
  0x32   :  { %3627 = vmatprep.mubr.msk.bf16.mxu1 %vm4097_vm0, %v4096_v1  ;;  %3624 = vmatpush3.bf16.msra.mxu1 %v4312_v26 }
  0x33   :  { %3625 = vmatprep.subr.bf16.mxu1 %v4096_v1 }
  0x36   :  { %3626 = vmatpush3.bf16.msra.mxu1 %v4321_v27 }
  0x37   :  { %3637 = vmatprep.subr.bf16.mxu1 %v4096_v1 }
  0x39   :  { %3628 = vmatmul.mubr.msk.bf16.vlgmr.msra.gmra.mrb[24].mxu1 %vm136_vm1, %v4179_v7 }
  0x3a   :  { %3639 = vmatprep.mubr.msk.bf16.mxu1 %vm4097_vm0, %v4096_v1 }
  0xdc   :  { %v174_v28 = vpop.f32.mrb[0].mxu1 }
  0xdd   :  { %v3541_v29 = vpop.f32.mrb[1].mxu1  ;;  %v280_v30 = vpop.f32.mrb[0].mxu0 }
  0xde   :  { %v177_v31 = vpop.f32.mrb[2].mxu1  ;;  %v3557_v32 = vpop.f32.mrb[1].mxu0 }
  0xdf   :  { %v764_v33 = vpack.c.bf16 %v177_v31, %v174_v28  ;;  %v3542_v34 = vpop.f32.mrb[3].mxu1  ;;  %v283_v35 = vpop.f32.mrb[2].mxu0 }
  0xe0   :  { %v766_v36 = vpack.c.bf16 %v283_v35, %v280_v30  ;;  %v3558_v37 = vpop.f32.mrb[3].mxu0 }
  0xe1   :  { %v112_v37 = vld [vmem:[%s5016_s1 + $0x20] sm:$0xf] }
  0xe2   :  { %vm122_vm3 = vcmp.gt.bf16.partialorder %v112_v37, 1056980736 }
  0xe4   :  { %v227_v38 = vpop.f32.mrb[4].mxu1 }
  0xe5   :  { %v386_v39 = vpop.f32.mrb[4].mxu0  ;;  %v3549_v40 = vpop.f32.mrb[5].mxu1 }
  0xe6   :  { %v3573_v41 = vpop.f32.mrb[5].mxu0  ;;  %v230_v42 = vpop.f32.mrb[6].mxu1 }
  0xe7   :  { %v765_v43 = vpack.c.bf16 %v230_v42, %v227_v38  ;;  %v389_v44 = vpop.f32.mrb[6].mxu0  ;;  %v3550_v45 = vpop.f32.mrb[7].mxu1  ;;  %v113_v38 = vld [vmem:[%s5016_s1 + $0x24] sm:$0xf] }
  0xe8   :  { %v768_v46 = vpack.c.bf16 %v389_v44, %v386_v39  ;;  %v3574_v47 = vpop.f32.mrb[7].mxu0  ;;  %vm123_vm4 = vcmp.gt.bf16.partialorder %v113_v38, 1056980736  ;;  %v4098_v39 = vmov 0   ;;  %v3361_v41 = vld [vmem:[%s5016_s1] sm:$0xff]  }
  0xe9   :  { %v981_v40 = vsel %vm122_vm3, 65537, %v4098_v39  ;;  %v982_v42 = vsel %vm123_vm4, 65537, %v4098_v39  ;;  %v3362_v44 = vunpack.c.l.bf16 %v3361_v41 }
  0xea   :  { %v781_v48 = vsel %vm776_vm2, %v768_v46, 0  ;;  %v984_v46 = vunpack.c.l.b16 %v982_v42 }
  0xeb   :  { %3632 = vmatpush3.bf16.xpose.msra.mxu0 %v781_v48 }
  0xec   :  { %v333_v49 = vpop.f32.mrb[8].mxu1  ;;  %3643 = vmatprep.subr.bf16.mxu0 %v4096_v1  ;;  %vm4381_vm7 = vcmp.ne.s32.totalorder %v984_v46, 0 }
  0xed   :  { %v492_v50 = vpop.f32.mrb[8].mxu0  ;;  %v3565_v51 = vpop.f32.mrb[9].mxu1 }
  0xee   :  { %v3589_v52 = vpop.f32.mrb[9].mxu0  ;;  %v336_v53 = vpop.f32.mrb[10].mxu1 }
  0xef   :  { %v767_v54 = vpack.c.bf16 %v336_v53, %v333_v49  ;;  %v495_v55 = vpop.f32.mrb[10].mxu0  ;;  %v3566_v56 = vpop.f32.mrb[11].mxu1  ;;  %v3363_v49 = vunpack.c.h.bf16 %v3361_v41 }
  0xf0   :  { %v770_v57 = vpack.c.bf16 %v495_v55, %v492_v50  ;;  %v3590_v58 = vpop.f32.mrb[11].mxu0  ;;  %v3393_v55 = vld [vmem:[%s5016_s1 + $0x10] sm:$0xff]  }
  0xf2   :  { %v875_v59 = vsel %vm776_vm2, %v770_v57, 0  ;;  %3634 = vmatmul.mubr.msk.bf16.vlgmr.msra.gmra.mrb[20].mxu0 %vm776_vm2, %v764_v33 }
  0xf3   :  { %3644 = vmatpush3.bf16.xpose.msra.mxu0 %v875_v59  ;;  %3645 = vmatprep.mubr.msk.bf16.mxu0 %vm4097_vm0, %v4096_v1 }
  0xf4   :  { %v439_v60 = vpop.f32.mrb[12].mxu1  ;;  %3655 = vmatprep.subr.bf16.mxu0 %v4096_v1 }
  0xf5   :  { %v3581_v61 = vpop.f32.mrb[13].mxu1 }
  0xf6   :  { %v442_v62 = vpop.f32.mrb[14].mxu1  ;;  %v598_v63 = vpop.f32.mrb[12].mxu0 }
  0xf7   :  { %v769_v0 = vpack.c.bf16 %v442_v62, %v439_v60  ;;  %v3582_v2 = vpop.f32.mrb[15].mxu1  ;;  %v3605_v3 = vpop.f32.mrb[13].mxu0  ;;  %v3370_v60 = vunpack.c.l.bf16 %v3393_v55 }
  0xf8   :  { %v601_v4 = vpop.f32.mrb[14].mxu0 }
  0xf9   :  { %v828_v7 = vsel %vm776_vm2, %v769_v0, 0  ;;  %v772_v8 = vpack.c.bf16 %v601_v4, %v598_v63  ;;  %v3606_v9 = vpop.f32.mrb[15].mxu0 }
  0xfa   :  { %3646 = vmatmul.mubr.msk.bf16.vlgmr.msra.gmra.mrb[24].mxu0 %vm776_vm2, %v766_v36  ;;  %3638 = vmatpush3.bf16.xpose.msra.mxu1 %v828_v7 }
  0xfb   :  { %3649 = vmatprep.subr.bf16.mxu1 %v4096_v1  ;;  %3656 = vmatpush3.bf16.msra.mxu0 %v772_v8  ;;  %v3392_v8 = vld [vmem:[%s5016_s1 + $0x8] sm:$0xff]  }
  0xfc   :  { %v545_v10 = vpop.f32.mrb[16].mxu1  ;;  %3657 = vmatprep.mubr.msk.bf16.mxu0 %vm4097_vm0, %v4096_v1  ;;  %3667 = vmatprep.subr.bf16.mxu0 %v4096_v1 }
  0xfd   :  { %v3597_v11 = vpop.f32.mrb[17].mxu1 }
  0xfe   :  { %v548_v12 = vpop.f32.mrb[18].mxu1  ;;  %v4350_v16 = vpop.f32.mrb[16].mxu0  ;;  %v3366_v11 = vunpack.c.l.bf16 %v3392_v8 }
  0xff   :  { %v771_v13 = vpack.c.bf16 %v548_v12, %v545_v10  ;;  %v3598_v14 = vpop.f32.mrb[19].mxu1  ;;  %v3621_v17 = vpop.f32.mrb[17].mxu0 }
 0x100   :  { %v4352_v18 = vpop.f32.mrb[18].mxu0 }
 0x101   :  { %v922_v15 = vsel %vm776_vm2, %v771_v13, 0  ;;  %3640 = vmatmul.mubr.msk.bf16.vlgmr.msra.gmra.mrb[28].mxu1 %vm776_vm2, %v765_v43  ;;  %v774_v19 = vpack.c.bf16 %v4352_v18, %v4350_v16  ;;  %v3622_v22 = vpop.f32.mrb[19].mxu0  ;;  %v983_v43 = vunpack.c.l.b16 %v981_v40 }
 0x102   :  { %3650 = vmatpush3.bf16.xpose.msra.mxu1 %v922_v15  ;;  %3651 = vmatprep.mubr.msk.bf16.mxu1 %vm4097_vm0, %v4096_v1  ;;  %v3367_v15 = vunpack.c.h.bf16 %v3392_v8  ;;  %v3371_v22 = vunpack.c.h.bf16 %v3393_v55 }
 0x103   :  { %3661 = vmatprep.subr.bf16.mxu1 %v4096_v1  ;;  %vm4374_vm5 = vcmp.ne.s32.totalorder %v983_v43, 0 }
 0x104   :  { %v651_v23 = vpop.f32.mrb[20].mxu1 }
 0x105   :  { %v3613_v28 = vpop.f32.mrb[21].mxu1 }
 0x106   :  { %v654_v29 = vpop.f32.mrb[22].mxu1 }
 0x107   :  { %v773_v30 = vpack.c.bf16 %v654_v29, %v651_v23  ;;  %v3614_v31 = vpop.f32.mrb[23].mxu1 }
 0x108   :  { %v3394_v31 = vld [vmem:[%s5016_s1 + $0x18] sm:$0xff]  }
 0x109   :  { %3652 = vmatmul.mubr.msk.bf16.vlgmr.msra.gmra.mrb[32].mxu1 %vm776_vm2, %v767_v54  ;;  %v3374_v40 = vunpack.c.l.bf16 %v3394_v31 }
 0x10a   :  { %3663 = vmatprep.mubr.msk.bf16.mxu1 %vm4097_vm0, %v4096_v1  ;;  %3662 = vmatpush3.bf16.msra.mxu1 %v773_v30 }
 0x10b   :  { %3673 = vmatprep.subr.bf16.mxu1 %v4096_v1 }
 0x10c   :  { %v4357_v32 = vpop.f32.mrb[24].mxu1 }
 0x10d   :  { %v3629_v33 = vpop.f32.mrb[25].mxu1 }
 0x10e   :  { %v4359_v34 = vpop.f32.mrb[26].mxu1 }
 0x10f   :  { %v775_v35 = vpack.c.bf16 %v4359_v34, %v4357_v32  ;;  %v3630_v36 = vpop.f32.mrb[27].mxu1  ;;  %v82_v32 = vld [vmem:[%s5018_s3] sm:$0xf] }
 0x110   :  { %v4447_v34 = vsel %vm1275_vm8, %v82_v32, 0 }
 0x1c5   :  { %v817_v45 = vpop.f32.mrb[20].mxu0 }
 0x1c6   :  { %v965_v47 = vmul.f32 0.35355338, %v817_v45  ;;  %v3635_v48 = vpop.f32.mrb[21].mxu0  ;;  %v3375_v45 = vunpack.c.h.bf16 %v3394_v31 }
 0x1c7   :  { %v820_v50 = vpop.f32.mrb[22].mxu0 }
 0x1c8   :  { %v973_v52 = vadd.f32 %v3362_v44, %v965_v47  ;;  %v966_v53 = vmul.f32 0.35355338, %v820_v50  ;;  %v3636_v54 = vpop.f32.mrb[23].mxu0 }
 0x1ca   :  { %v974_v57 = vadd.f32 %v3363_v49, %v966_v53  ;;  %v991_v58 = vsel %vm4374_vm5, -1e-09, %v973_v52 }
 0x1cb   :  { %v1000_v59 = vsel %vm999_vm6, %v991_v58, -inf }
 0x1cc   :  { %1001 = vmax.xlane.f32.xlu0 %v1000_v59  ;;  %v992_v61 = vsel %vm4381_vm7, -1e-09, %v974_v57 }
 0x1cd   :  { %v911_v62 = vpop.f32.mrb[24].mxu0  ;;  %v1003_v3 = vsel %vm999_vm6, %v992_v61, -inf }
 0x1ce   :  { %v969_v63 = vmul.f32 0.35355338, %v911_v62  ;;  %v3647_v0 = vpop.f32.mrb[25].mxu0 }
 0x1cf   :  { %v914_v2 = vpop.f32.mrb[26].mxu0 }
 0x1d0   :  { %v977_v4 = vadd.f32 %v3370_v60, %v969_v63  ;;  %1004 = vmax.xlane.f32.xlu0 %v1003_v3  ;;  %v3648_v7 = vpop.f32.mrb[27].mxu0  ;;  %v970_v23 = vmul.f32 0.35355338, %v914_v2 }
 0x1d2   :  { %v995_v9 = vsel %vm4374_vm5, -1e-09, %v977_v4  ;;  %v978_v38 = vadd.f32 %v3371_v22, %v970_v23 }
 0x1d3   :  { %v1012_v10 = vsel %vm999_vm6, %v995_v9, -inf }
 0x1d4   :  { %1013 = vmax.xlane.f32.xlu0 %v1012_v10  ;;  %v864_v12 = vpop.f32.mrb[28].mxu1  ;;  %v996_v52 = vsel %vm4381_vm7, -1e-09, %v978_v38 }
 0x1d5   :  { %v967_v13 = vmul.f32 0.35355338, %v864_v12  ;;  %v3641_v14 = vpop.f32.mrb[29].mxu1  ;;  %v1015_v55 = vsel %vm999_vm6, %v996_v52, -inf }
 0x1d6   :  { %v867_v17 = vpop.f32.mrb[30].mxu1 }
 0x1d7   :  { %v975_v28 = vadd.f32 %v3366_v11, %v967_v13  ;;  %v968_v29 = vmul.f32 0.35355338, %v867_v17  ;;  %v3642_v30 = vpop.f32.mrb[31].mxu1 }
 0x1d9   :  { %v976_v33 = vadd.f32 %v3367_v15, %v968_v29  ;;  %v993_v36 = vsel %vm4374_vm5, -1e-09, %v975_v28 }
 0x1da   :  { %v1006_v37 = vsel %vm999_vm6, %v993_v36, -inf }
 0x1db   :  { %1007 = vmax.xlane.f32.xlu1 %v1006_v37  ;;  %v994_v41 = vsel %vm4381_vm7, -1e-09, %v976_v33 }
 0x1dc   :  { %v958_v42 = vpop.f32.mrb[32].mxu1  ;;  %v1009_v47 = vsel %vm999_vm6, %v994_v41, -inf }
 0x1dd   :  { %v971_v43 = vmul.f32 0.35355338, %v958_v42  ;;  %v3653_v44 = vpop.f32.mrb[33].mxu1 }
 0x1de   :  { %v961_v46 = vpop.f32.mrb[34].mxu1 }
 0x1df   :  { %v979_v48 = vadd.f32 %v3374_v40, %v971_v43  ;;  %v972_v49 = vmul.f32 0.35355338, %v961_v46  ;;  %1010 = vmax.xlane.f32.xlu1 %v1009_v47  ;;  %v3654_v50 = vpop.f32.mrb[35].mxu1 }
 0x1e1   :  { %v980_v53 = vadd.f32 %v3375_v45, %v972_v49  ;;  %v997_v54 = vsel %vm4374_vm5, -1e-09, %v979_v48 }
 0x1e2   :  { %v1018_v57 = vsel %vm999_vm6, %v997_v54, -inf }
 0x1e3   :  { %1016 = vmax.xlane.f32.xlu1 %v1015_v55  ;;  %1019 = vmax.xlane.f32.xlu0 %v1018_v57  ;;  %v998_v59 = vsel %vm4381_vm7, -1e-09, %v980_v53 }
 0x1e4   :  { %v1021_v60 = vsel %vm999_vm6, %v998_v59, -inf }
 0x1e7   :  { %1022 = vmax.xlane.f32.xlu1 %v1021_v60 }
 0x259   :  { %v1002_v62 = vpop.xlane.xlu0 %1001 }
 0x25a   :  { %v1024_v63 = vsub.f32 %v991_v58, %v1002_v62 }
 0x25c   :  { %v1032_v0 = vmul.f32 1.442695, %v1024_v63 }
 0x25d   :  { %v1005_v2 = vpop.xlane.xlu0 %1004 }
 0x25e   :  { %3947 = vpow2.f32 %v1032_v0  ;;  %v1025_v3 = vsub.f32 %v992_v61, %v1005_v2 }
 0x260   :  { %v1034_v51 = vmul.f32 1.442695, %v1025_v3 }
 0x261   :  { %v1014_v4 = vpop.xlane.xlu0 %1013 }
 0x262   :  { %3949 = vpow2.f32 %v1034_v51  ;;  %v1028_v7 = vsub.f32 %v995_v9, %v1014_v4 }
 0x264   :  { %v1040_v56 = vmul.f32 1.442695, %v1028_v7 }
 0x268   :  { %v3948_v8 = vpop.eup %3947  ;;  %v1008_v10 = vpop.xlane.xlu1 %1007 }
 0x269   :  { %v1026_v11 = vsub.f32 %v993_v36, %v1008_v10  ;;  %v1048_v12 = vsel %vm999_vm6, %v3948_v8, 0.0 }
 0x26a   :  { %1049 = vadd.xlane.f32.xlu0 %v1048_v12 }
 0x26b   :  { %v1036_v13 = vmul.f32 1.442695, %v1026_v11 }
 0x26c   :  { %v3950_v14 = vpop.eup %3949  ;;  %v1011_v15 = vpop.xlane.xlu1 %1010 }
 0x26d   :  { %3951 = vpow2.f32 %v1036_v13  ;;  %v1027_v58 = vsub.f32 %v994_v41, %v1011_v15  ;;  %v1051_v17 = vsel %vm999_vm6, %v3950_v14, 0.0 }
 0x26e   :  { %1052 = vadd.xlane.f32.xlu1 %v1051_v17  ;;  %3953 = vpow2.f32 %v1040_v56 }
 0x26f   :  { %v1038_v61 = vmul.f32 1.442695, %v1027_v58 }
 0x270   :  { %v1017_v22 = vpop.xlane.xlu1 %1016  ;;  %v1020_v23 = vpop.xlane.xlu0 %1019 }
 0x271   :  { %3955 = vpow2.f32 %v1038_v61  ;;  %v1029_v9 = vsub.f32 %v996_v52, %v1017_v22  ;;  %v1030_v28 = vsub.f32 %v997_v54, %v1020_v23  ;;  %v84_v22 = vld [vmem:[%s5018_s3 + $0x8] sm:$0xf] }
 0x273   :  { %v1042_v29 = vmul.f32 1.442695, %v1029_v9  ;;  %v1044_v30 = vmul.f32 1.442695, %v1030_v28 }
 0x274   :  { %v1023_v31 = vpop.xlane.xlu1 %1022 }
 0x275   :  { %3957 = vpow2.f32 %v1042_v29  ;;  %v1031_v33 = vsub.f32 %v998_v59, %v1023_v31 }
 0x276   :  { %3959 = vpow2.f32 %v1044_v30  ;;  %v4463_v30 = vsel %vm1275_vm8, %v84_v22, 0 }
 0x277   :  { %v3952_v36 = vpop.eup %3951  ;;  %v1046_v37 = vmul.f32 1.442695, %v1031_v33  ;;  %v85_v33 = vld [vmem:[%s5018_s3 + $0xc] sm:$0xf] }
 0x278   :  { %v1054_v38 = vsel %vm999_vm6, %v3952_v36, 0.0  ;;  %v3954_v40 = vpop.eup %3953 }
 0x279   :  { %3961 = vpow2.f32 %v1046_v37  ;;  %1055 = vadd.xlane.f32.xlu0 %v1054_v38  ;;  %v1060_v42 = vsel %vm999_vm6, %v3954_v40, 0.0 }
 0x27b   :  { %v3956_v41 = vpop.eup %3955 }
 0x27c   :  { %v1057_v43 = vsel %vm999_vm6, %v3956_v41, 0.0 }
 0x27d   :  { %1061 = vadd.xlane.f32.xlu0 %v1060_v42  ;;  %1058 = vadd.xlane.f32.xlu1 %v1057_v43  ;;  %v4474_v42 = vsel %vm1275_vm8, %v85_v33, 0 }
 0x27f   :  { %v3958_v44 = vpop.eup %3957 }
 0x280   :  { %v3960_v45 = vpop.eup %3959  ;;  %v1063_v46 = vsel %vm999_vm6, %v3958_v44, 0.0 }
 0x281   :  { %v1066_v47 = vsel %vm999_vm6, %v3960_v45, 0.0  ;;  %1064 = vadd.xlane.f32.xlu1 %v1063_v46 }
 0x282   :  { %1067 = vadd.xlane.f32.xlu0 %v1066_v47 }
 0x283   :  { %v3962_v48 = vpop.eup %3961 }
 0x284   :  { %v1069_v49 = vsel %vm999_vm6, %v3962_v48, 0.0 }
 0x285   :  { %1070 = vadd.xlane.f32.xlu1 %v1069_v49 }
 0x2f7   :  { %v1050_v50 = vpop.xlane.xlu0 %1049 }
 0x2f8   :  { %3963 = vrcp.f32 %v1050_v50 }
 0x2fb   :  { %v1053_v52 = vpop.xlane.xlu1 %1052 }
 0x2fc   :  { %3965 = vrcp.f32 %v1053_v52 }
 0x302   :  { %v3964_v53 = vpop.eup %3963 }
 0x303   :  { %v1080_v57 = vmul.f32 %v3964_v53, %v3948_v8 }
 0x306   :  { %v3966_v54 = vpop.eup %3965  ;;  %v1056_v55 = vpop.xlane.xlu0 %1055 }
 0x307   :  { %v1081_v59 = vmul.f32 %v3966_v54, %v3950_v14  ;;  %3967 = vrcp.f32 %v1056_v55 }
 0x309   :  { %v1088_v60 = vpack.c.bf16 %v1081_v59, %v1080_v57 }
 0x30a   :  { %v1062_v62 = vpop.xlane.xlu0 %1061  ;;  %v1059_v63 = vpop.xlane.xlu1 %1058 }
 0x30b   :  { %3658 = vmatmul.mubr.msk.bf16.vlgmr.msra.gmra.mrb[28].mxu0 %vm999_vm6, %v1088_v60  ;;  %3969 = vrcp.f32 %v1059_v63 }
 0x30c   :  { %3668 = vmatpush3.bf16.msra.mxu0 %v774_v19  ;;  %3669 = vmatprep.mubr.msk.bf16.mxu0 %vm4097_vm0, %v4096_v1  ;;  %3971 = vrcp.f32 %v1062_v62 }
 0x30d   :  { %3679 = vmatprep.subr.bf16.mxu0 %v4096_v1 }
 0x30e   :  { %v1065_v0 = vpop.xlane.xlu1 %1064 }
 0x30f   :  { %v1068_v2 = vpop.xlane.xlu0 %1067  ;;  %3973 = vrcp.f32 %v1065_v0 }
 0x310   :  { %3975 = vrcp.f32 %v1068_v2 }
 0x311   :  { %v3968_v51 = vpop.eup %3967 }
 0x312   :  { %v1071_v3 = vpop.xlane.xlu1 %1070  ;;  %v1082_v8 = vmul.f32 %v3968_v51, %v3952_v36 }
 0x313   :  { %3977 = vrcp.f32 %v1071_v3 }
 0x315   :  { %v3970_v4 = vpop.eup %3969 }
 0x316   :  { %v3972_v7 = vpop.eup %3971  ;;  %v1083_v10 = vmul.f32 %v3970_v4, %v3956_v41 }
 0x317   :  { %v1084_v19 = vmul.f32 %v3972_v7, %v3954_v40 }
 0x318   :  { %v1089_v18 = vpack.c.bf16 %v1083_v10, %v1082_v8 }
 0x319   :  { %v3974_v16 = vpop.eup %3973 }
 0x31a   :  { %v1085_v11 = vmul.f32 %v3974_v16, %v3958_v44  ;;  %v3976_v12 = vpop.eup %3975  ;;  %3664 = vmatmul.mubr.msk.bf16.vlgmr.msra.gmra.mrb[36].mxu1 %vm999_vm6, %v1089_v18 }
 0x31b   :  { %3674 = vmatpush3.bf16.msra.mxu1 %v775_v35  ;;  %3675 = vmatprep.mubr.msk.bf16.mxu1 %vm4097_vm0, %v4096_v1  ;;  %v1086_v14 = vmul.f32 %v3976_v12, %v3960_v45  ;;  %v83_v35 = vld [vmem:[%s5018_s3 + $0x4] sm:$0xf] }
 0x31c   :  { %v1090_v56 = vpack.c.bf16 %v1085_v11, %v1084_v19  ;;  %3685 = vmatprep.subr.bf16.mxu1 %v4096_v1  ;;  %v4455_v17 = vsel %vm1275_vm8, %v83_v35, 0 }
 0x31d   :  { %v3978_v13 = vpop.eup %3977 }
 0x31e   :  { %v1087_v15 = vmul.f32 %v3978_v13, %v3962_v48  ;;  %3670 = vmatmul.mubr.msk.bf16.vlgmr.msra.gmra.mrb[32].mxu0 %vm999_vm6, %v1090_v56 }
 0x31f   :  { %3681 = vmatprep.mubr.msk.bf16.mxu0 %vm4097_vm0, %v4096_v1  ;;  %3680 = vmatpush3.bf16.msra.mxu0 %v4447_v34 }
 0x320   :  { %v1091_v58 = vpack.c.bf16 %v1087_v15, %v1086_v14  ;;  %3691 = vmatprep.subr.bf16.mxu0 %v4096_v1 }
 0x322   :  { %3676 = vmatmul.mubr.msk.bf16.vlgmr.msra.gmra.mrb[40].mxu1 %vm999_vm6, %v1091_v58 }
 0x323   :  { %3687 = vmatprep.mubr.msk.bf16.mxu1 %vm4097_vm0, %v4096_v1  ;;  %3686 = vmatpush3.bf16.msra.mxu1 %v4455_v17 }
 0x324   :  { %3697 = vmatprep.subr.bf16.mxu1 %v4096_v1 }
 0x3de   :  { %v1129_v61 = vpop.f32.mrb[28].mxu0 }
 0x3df   :  { %v3659_v23 = vpop.f32.mrb[29].mxu0 }
 0x3e0   :  { %v1132_v9 = vpop.f32.mrb[30].mxu0 }
 0x3e1   :  { %v1268_v28 = vpack.c.bf16 %v1132_v9, %v1129_v61  ;;  %v3660_v29 = vpop.f32.mrb[31].mxu0 }
 0x3e3   :  { %3682 = vmatmul.mubr.msk.bf16.vlgmr.msra.gmra.mrb[36].mxu0 %vm776_vm2, %v1268_v28 }
 0x3e4   :  { %3692 = vmatpush3.bf16.msra.mxu0 %v4463_v30  ;;  %3693 = vmatprep.mubr.msk.bf16.mxu0 %vm4097_vm0, %v4096_v1 }
 0x3e5   :  { %3703 = vmatprep.subr.bf16.mxu0 %v4096_v1 }
 0x3ed   :  { %v1173_v31 = vpop.f32.mrb[36].mxu1 }
 0x3ee   :  { %v3665_v36 = vpop.f32.mrb[37].mxu1 }
 0x3ef   :  { %v1176_v37 = vpop.f32.mrb[38].mxu1 }
 0x3f0   :  { %v1269_v38 = vpack.c.bf16 %v1176_v37, %v1173_v31  ;;  %v3666_v40 = vpop.f32.mrb[39].mxu1 }
 0x3f1   :  { %v1217_v41 = vpop.f32.mrb[32].mxu0 }
 0x3f2   :  { %v3671_v43 = vpop.f32.mrb[33].mxu0  ;;  %3688 = vmatmul.mubr.msk.bf16.vlgmr.msra.gmra.mrb[44].mxu1 %vm776_vm2, %v1269_v38 }
 0x3f3   :  { %v1220_v44 = vpop.f32.mrb[34].mxu0  ;;  %3698 = vmatpush3.bf16.msra.mxu1 %v4474_v42  ;;  %3699 = vmatprep.mubr.msk.bf16.mxu1 %vm4097_vm0, %v4096_v1 }
 0x3f4   :  { %v1270_v45 = vpack.c.bf16 %v1220_v44, %v1217_v41  ;;  %v3672_v46 = vpop.f32.mrb[35].mxu0  ;;  %3711 = vmatprep.subr.bf16.mxu1 %v4096_v1 }
 0x3f5   :  { %v1261_v47 = vpop.f32.mrb[40].mxu1 }
 0x3f6   :  { %3694 = vmatmul.mubr.msk.bf16.vlgmr.msra.gmra.mrb[40].mxu0 %vm776_vm2, %v1270_v45  ;;  %v3677_v48 = vpop.f32.mrb[41].mxu1 }
 0x3f7   :  { %3707 = vmatprep.mubr.msk.bf16.mxu0 %vm4097_vm0, %v4096_v1  ;;  %v1264_v49 = vpop.f32.mrb[42].mxu1 }
 0x3f8   :  { %v1271_v50 = vpack.c.bf16 %v1264_v49, %v1261_v47  ;;  %v3678_v52 = vpop.f32.mrb[43].mxu1  ;;  %v1504_v47 = vlaneseq }
 0x3fa   :  { %3700 = vmatmul.mubr.msk.bf16.vlgmr.msra.gmra.mrb[48].mxu1 %vm776_vm2, %v1271_v50  ;;  %v4501_v52 = vshrl.u32 %v1504_v47, 7 }
 0x3fb   :  { %3719 = vmatprep.mubr.msk.bf16.mxu1 %vm4097_vm0, %v4096_v1 }
 0x4b6   :  { %v1313_v53 = vpop.f32.mrb[36].mxu0 }
 0x4b7   :  { %v3683_v54 = vpop.f32.mrb[37].mxu0  ;;  %v1461_v60 = vsel %vm136_vm1, %v1313_v53, 0.0  ;;  %v1506_v53 = vsub.s32 0, %v4501_v52 }
 0x4b8   :  { %v1316_v55 = vpop.f32.mrb[38].mxu0  ;;  %v99_v54 = vld [vmem:[%s5022_s7] sm:$0xff] }
 0x4b9   :  { %v3684_v57 = vpop.f32.mrb[39].mxu0  ;;  %v1468_v3 = vsel %vm136_vm1, %v1316_v55, 0.0  ;;  %v1512_v55 = vsub.s32 1, %v4501_v52 }
 0x4ba   :  { %v4508_v57 = vrot.slane %v99_v54, %v1506_v53  ;;  %v4565_v53 = vld [vmem:[%s5015_s0 + $0x10] sm:$0xff] }
 0x4c5   :  { %v1360_v59 = vpop.f32.mrb[44].mxu1 }
 0x4c6   :  { %v1462_v62 = vsel %vm136_vm1, %v1360_v59, 0.0  ;;  %v3689_v63 = vpop.f32.mrb[45].mxu1 }
 0x4c7   :  { %v1463_v0 = vadd.f32 %v1462_v62, %v1461_v60  ;;  %v1363_v2 = vpop.f32.mrb[46].mxu1  ;;  %v4510_v62 = vrot.slane %v99_v54, %v1512_v55 }
 0x4c8   :  { %v1469_v51 = vsel %vm136_vm1, %v1363_v2, 0.0  ;;  %v3690_v4 = vpop.f32.mrb[47].mxu1 }
 0x4c9   :  { %v1407_v7 = vpop.f32.mrb[40].mxu0  ;;  %v1470_v8 = vadd.f32 %v1469_v51, %v1468_v3  ;;  %v4051_v4 = vld [vmem:[%s5015_s0] sm:$0xff] }
 0x4ca   :  { %v1464_v10 = vsel %vm136_vm1, %v1407_v7, 0.0  ;;  %v3695_v16 = vpop.f32.mrb[41].mxu0 }
 0x4cb   :  { %v1465_v18 = vadd.f32 %v1464_v10, %v1463_v0  ;;  %v1410_v19 = vpop.f32.mrb[42].mxu0  ;;  %v4052_v16 = vld [vmem:[%s5015_s0 + $0x8] sm:$0xff] }
 0x4cc   :  { %v1471_v11 = vsel %vm136_vm1, %v1410_v19, 0.0  ;;  %v3696_v12 = vpop.f32.mrb[43].mxu0 }
 0x4cd   :  { %v1472_v56 = vadd.f32 %v1471_v11, %v1470_v8  ;;  %v1454_v13 = vpop.f32.mrb[48].mxu1 }
 0x4ce   :  { %v1466_v14 = vsel %vm136_vm1, %v1454_v13, 0.0  ;;  %v3701_v15 = vpop.f32.mrb[49].mxu1 }
 0x4cf   :  { %v1467_v58 = vadd.f32 %v1466_v14, %v1465_v18  ;;  %v1457_v32 = vpop.f32.mrb[50].mxu1 }
 0x4d0   :  { %v1473_v35 = vsel %vm136_vm1, %v1457_v32, 0.0  ;;  %v3702_v61 = vpop.f32.mrb[51].mxu1 }
 0x4d1   :  { %v1474_v22 = vadd.f32 %v1473_v35, %v1472_v56  ;;  %v1475_v23 = vadd.f32 %v1467_v58, %v4170_v5 }
 0x4d3   :  { %v1477_v9 = vsel %vm136_vm1, %v1475_v23, 0.0  ;;  %v1476_v28 = vadd.f32 %v1474_v22, %v4175_v6  ;;  %v4529_v22 = vld [vmem:[%s5019_s4] sm:$0xff]  }
 0x4d4   :  { %1478 = vadd.xlane.f32.xlu0 %v1477_v9  ;;  %3704 = vmatpush3.bf16.msra.mxu0 %v4529_v22 }
 0x4d5   :  { %v1480_v29 = vsel %vm136_vm1, %v1476_v28, 0.0  ;;  %3705 = vmatprep.subr.bf16.mxu0 %v4096_v1 }
 0x4d6   :  { %1481 = vadd.xlane.f32.xlu1 %v1480_v29 }
 0x561   :  { %v1479_v31 = vpop.xlane.xlu0 %1478 }
 0x562   :  { %v1484_v33 = vmul.f32 0.03125, %v1479_v31 }
 0x563   :  { %v1482_v36 = vpop.xlane.xlu1 %1481 }
 0x564   :  { %v1486_v37 = vsub.f32 %v1475_v23, %v1484_v33  ;;  %v1485_v38 = vmul.f32 0.03125, %v1482_v36  ;;  %v4535_v23 = vld [vmem:[%s5019_s4 + $0x8] sm:$0xff]  }
 0x565   :  { %3706 = vmatpush3.bf16.msra.mxu0 %v4535_v23 }
 0x566   :  { %v1487_v40 = vsub.f32 %v1476_v28, %v1485_v38  ;;  %v1488_v41 = vmul.f32 %v1486_v37, %v1486_v37  ;;  %3723 = vmatprep.subr.bf16.mxu0 %v4096_v1 }
 0x568   :  { %v1490_v43 = vsel %vm136_vm1, %v1488_v41, 0.0  ;;  %v1489_v44 = vmul.f32 %v1487_v40, %v1487_v40 }
 0x569   :  { %1491 = vadd.xlane.f32.xlu0 %v1490_v43 }
 0x56a   :  { %v1493_v5 = vsel %vm136_vm1, %v1489_v44, 0.0 }
 0x56b   :  { %1494 = vadd.xlane.f32.xlu1 %v1493_v5 }
 0x5f6   :  { %v1492_v45 = vpop.xlane.xlu0 %1491 }
 0x5f7   :  { %v1496_v6 = vmul.f32 0.03125, %v1492_v45 }
 0x5f8   :  { %v1495_v46 = vpop.xlane.xlu1 %1494 }
 0x5f9   :  { %v1498_v48 = vadd.f32 1e-06, %v1496_v6  ;;  %v1497_v49 = vmul.f32 0.03125, %v1495_v46 }
 0x5fb   :  { %3979 = vrsqrt.f32 %v1498_v48  ;;  %v1499_v50 = vadd.f32 1e-06, %v1497_v49 }
 0x5fd   :  { %3981 = vrsqrt.f32 %v1499_v50  ;;  %v4053_v50 = vld [vmem:[%s5017_s2] sm:$0xff]  }
 0x605   :  { %v3980_v59 = vpop.eup %3979 }
 0x606   :  { %v1502_v60 = vmul.f32 %v3980_v59, %v1486_v37  ;;  %v1546_v37 = vsub.s32 2, %v4501_v52  ;;  %v4054_v59 = vld [vmem:[%s5017_s2 + $0x8] sm:$0xff]  }
 0x607   :  { %v3982_v63 = vpop.eup %3981 }
 0x608   :  { %v1508_v0 = vmul.f32 %v4508_v57, %v1502_v60  ;;  %v1503_v2 = vmul.f32 %v3982_v63, %v1487_v40  ;;  %v4541_v38 = vrot.slane %v99_v54, %v1546_v37  ;;  %v1552_v40 = vsub.s32 3, %v4501_v52  ;;  %v4055_v60 = vld [vmem:[%s5017_s2 + $0x10] sm:$0xff]   ;;  %v4056_v63 = vld [vmem:[%s5017_s2 + $0x18] sm:$0xff]  }
 0x60a   :  { %v1514_v3 = vadd.f32 %v4510_v62, %v1508_v0  ;;  %v1509_v51 = vmul.f32 %v4508_v57, %v1503_v2  ;;  %v4545_v6 = vrot.slane %v99_v54, %v1552_v40  ;;  %v4570_v54 = vld [vmem:[%s5015_s0 + $0x18] sm:$0xff]  ;;  %v4057_v0 = vld [vmem:[%s5017_s2 + $0x30] sm:$0xff]  }
 0x60b   :  { %v4575_v55 = vpack.c.bf16 %v4570_v54, %v4565_v53  ;;  %v4058_v2 = vld [vmem:[%s5017_s2 + $0x38] sm:$0xff]  }
 0x60c   :  { %v1516_v7 = vadd.f32 %v4051_v4, %v1514_v3  ;;  %v1515_v8 = vadd.f32 %v4510_v62, %v1509_v51  ;;  %v4059_v3 = vld [vmem:[%s5017_s2 + $0x50] sm:$0xff]   ;;  %v4060_v51 = vld [vmem:[%s5017_s2 + $0x58] sm:$0xff]  }
 0x60e   :  { %v1518_v10 = vsel %vm136_vm1, %v1516_v7, 0.0  ;;  %v1517_v18 = vadd.f32 %v4052_v16, %v1515_v8 }
 0x60f   :  { %1519 = vadd.xlane.f32.xlu0 %v1518_v10 }
 0x610   :  { %v1521_v19 = vsel %vm136_vm1, %v1517_v18, 0.0 }
 0x611   :  { %1522 = vadd.xlane.f32.xlu1 %v1521_v19 }
 0x69c   :  { %v1520_v11 = vpop.xlane.xlu0 %1519 }
 0x69d   :  { %v1524_v12 = vmul.f32 0.03125, %v1520_v11 }
 0x69e   :  { %v1523_v56 = vpop.xlane.xlu1 %1522 }
 0x69f   :  { %v1526_v13 = vsub.f32 %v1516_v7, %v1524_v12  ;;  %v1525_v14 = vmul.f32 0.03125, %v1523_v56 }
 0x6a1   :  { %v1527_v15 = vsub.f32 %v1517_v18, %v1525_v14  ;;  %v1528_v58 = vmul.f32 %v1526_v13, %v1526_v13 }
 0x6a3   :  { %v1530_v32 = vsel %vm136_vm1, %v1528_v58, 0.0  ;;  %v1529_v35 = vmul.f32 %v1527_v15, %v1527_v15 }
 0x6a4   :  { %1531 = vadd.xlane.f32.xlu0 %v1530_v32 }
 0x6a5   :  { %v1533_v61 = vsel %vm136_vm1, %v1529_v35, 0.0 }
 0x6a6   :  { %1534 = vadd.xlane.f32.xlu1 %v1533_v61 }
 0x731   :  { %v1532_v9 = vpop.xlane.xlu0 %1531 }
 0x732   :  { %v1536_v28 = vmul.f32 0.03125, %v1532_v9 }
 0x733   :  { %v1535_v29 = vpop.xlane.xlu1 %1534 }
 0x734   :  { %v1538_v31 = vadd.f32 1e-05, %v1536_v28  ;;  %v1537_v33 = vmul.f32 0.03125, %v1535_v29 }
 0x736   :  { %3983 = vrsqrt.f32 %v1538_v31  ;;  %v1539_v36 = vadd.f32 1e-05, %v1537_v33 }
 0x738   :  { %3985 = vrsqrt.f32 %v1539_v36 }
 0x740   :  { %v3984_v41 = vpop.eup %3983 }
 0x741   :  { %v1542_v43 = vmul.f32 %v3984_v41, %v1526_v13 }
 0x742   :  { %v3986_v44 = vpop.eup %3985 }
 0x743   :  { %v1548_v5 = vmul.f32 %v4541_v38, %v1542_v43  ;;  %v1543_v45 = vmul.f32 %v3986_v44, %v1527_v15 }
 0x745   :  { %v1549_v46 = vmul.f32 %v4541_v38, %v1543_v45  ;;  %v4549_v47 = vadd.f32 %v4545_v6, %v1548_v5 }
 0x747   :  { %v4552_v48 = vadd.f32 %v4545_v6, %v1549_v46 }
 0x749   :  { %v1556_v49 = vpack.c.bf16 %v4552_v48, %v4549_v47 }
 0x74b   :  { %3708 = vmatmul.mubr.msk.bf16.vlgmr.msra.gmra.mrb[44].mxu0 %vm136_vm1, %v1556_v49 }
 0x74c   :  { %3724 = vmatpush3.bf16.msra.mxu0 %v4053_v50  ;;  %3727 = vmatprep.mubr.msk.bf16.mxu0 %vm4097_vm0, %v4096_v1 }
 0x74d   :  { %3725 = vmatprep.subr.bf16.mxu0 %v4096_v1 }
 0x750   :  { %3726 = vmatpush3.bf16.msra.mxu0 %v4054_v59 }
 0x751   :  { %3731 = vmatprep.subr.bf16.mxu0 %v4096_v1 }
 0x753   :  { %3728 = vmatmul.mubr.msk.bf16.vlgmr.msra.gmra.mrb[48].mxu0 %vm136_vm1, %v4575_v55 }
 0x754   :  { %3732 = vmatpush3.bf16.msra.mxu0 %v4055_v60  ;;  %3735 = vmatprep.mubr.msk.bf16.mxu0 %vm4097_vm0, %v4096_v1 }
 0x755   :  { %3733 = vmatprep.subr.bf16.mxu0 %v4096_v1 }
 0x758   :  { %3734 = vmatpush3.bf16.msra.mxu0 %v4056_v63 }
 0x759   :  { %3747 = vmatprep.subr.bf16.mxu0 %v4096_v1 }
 0x75b   :  { %3736 = vmatmul.mubr.msk.bf16.vlgmr.msra.gmra.mrb[52].mxu0 %vm136_vm1, %v4575_v55 }
 0x75c   :  { %3748 = vmatpush3.bf16.msra.mxu0 %v4057_v0  ;;  %3751 = vmatprep.mubr.msk.bf16.mxu0 %vm4097_vm0, %v4096_v1 }
 0x75d   :  { %3749 = vmatprep.subr.bf16.mxu0 %v4096_v1 }
 0x760   :  { %3750 = vmatpush3.bf16.msra.mxu0 %v4058_v2 }
 0x761   :  { %3763 = vmatprep.subr.bf16.mxu0 %v4096_v1 }
 0x763   :  { %3752 = vmatmul.mubr.msk.bf16.vlgmr.msra.gmra.mrb[56].mxu0 %vm136_vm1, %v4575_v55 }
 0x764   :  { %3764 = vmatpush3.bf16.msra.mxu0 %v4059_v3  ;;  %3767 = vmatprep.mubr.msk.bf16.mxu0 %vm4097_vm0, %v4096_v1 }
 0x765   :  { %3765 = vmatprep.subr.bf16.mxu0 %v4096_v1 }
 0x768   :  { %3766 = vmatpush3.bf16.msra.mxu0 %v4060_v51 }
 0x769   :  { %3779 = vmatprep.subr.bf16.mxu0 %v4096_v1 }
 0x76b   :  { %3768 = vmatmul.mubr.msk.bf16.vlgmr.msra.gmra.mrb[60].mxu0 %vm136_vm1, %v4575_v55 }
 0x76c   :  { %3780 = vmatpush3.bf16.msra.mxu0 %v4256_v20  ;;  %3783 = vmatprep.mubr.msk.bf16.mxu0 %vm4097_vm0, %v4096_v1  ;;  %v4648_v20 = vld [vmem:[%s5021_s6] sm:$0xff]  }
 0x76d   :  { %3781 = vmatprep.subr.bf16.mxu0 %v4096_v1  ;;  %3712 = vmatpush3.bf16.msra.mxu1 %v4648_v20 }
 0x76e   :  { %3713 = vmatprep.subr.bf16.mxu1 %v4096_v1 }
 0x770   :  { %3782 = vmatpush3.bf16.msra.mxu0 %v4266_v21  ;;  %v4654_v21 = vld [vmem:[%s5021_s6 + $0x8] sm:$0xff]  }
 0x771   :  { %3795 = vmatprep.subr.bf16.mxu0 %v4096_v1  ;;  %3714 = vmatpush3.bf16.msra.mxu1 %v4654_v21 }
 0x772   :  { %3715 = vmatprep.subr.bf16.mxu1 %v4096_v1 }
 0x773   :  { %3784 = vmatmul.mubr.msk.bf16.vlgmr.msra.gmra.mrb[64].mxu0 %vm136_vm1, %v4575_v55 }
 0x774   :  { %3796 = vmatpush3.bf16.msra.mxu0 %v4291_v24  ;;  %3799 = vmatprep.mubr.msk.bf16.mxu0 %vm4097_vm0, %v4096_v1  ;;  %v4661_v24 = vld [vmem:[%s5021_s6 + $0x10] sm:$0xff]  }
 0x775   :  { %3797 = vmatprep.subr.bf16.mxu0 %v4096_v1  ;;  %3716 = vmatpush3.bf16.msra.mxu1 %v4661_v24 }
 0x776   :  { %3717 = vmatprep.subr.bf16.mxu1 %v4096_v1 }
 0x778   :  { %3798 = vmatpush3.bf16.msra.mxu0 %v4301_v25  ;;  %v4668_v25 = vld [vmem:[%s5021_s6 + $0x18] sm:$0xff]  }
 0x779   :  { %3811 = vmatprep.subr.bf16.mxu0 %v4096_v1  ;;  %3718 = vmatpush3.bf16.msra.mxu1 %v4668_v25 }
 0x77a   :  { %3739 = vmatprep.subr.bf16.mxu1 %v4096_v1 }
 0x77b   :  { %3800 = vmatmul.mubr.msk.bf16.vlgmr.msra.gmra.mrb[68].mxu0 %vm136_vm1, %v4575_v55 }
 0x77c   :  { %3812 = vmatpush3.bf16.msra.mxu0 %v4312_v26  ;;  %3815 = vmatprep.mubr.msk.bf16.mxu0 %vm4097_vm0, %v4096_v1  ;;  %v4676_v26 = vld [vmem:[%s5020_s5] ss:$0 sm:$0xff] }
 0x77d   :  { %3813 = vmatprep.subr.bf16.mxu0 %v4096_v1 }
 0x780   :  { %3814 = vmatpush3.bf16.msra.mxu0 %v4321_v27 }
 0x781   :  { %3825 = vmatprep.subr.bf16.mxu0 %v4096_v1 }
 0x783   :  { %3816 = vmatmul.mubr.msk.bf16.vlgmr.msra.gmra.mrb[72].mxu0 %vm136_vm1, %v4575_v55 }
 0x784   :  { %3827 = vmatprep.mubr.msk.bf16.mxu0 %vm4097_vm0, %v4096_v1 }
 0x81e   :  { %v1612_v27 = vpop.f32.mrb[44].mxu0 }
 0x81f   :  { %v1613_v4 = vadd.f32 %v4676_v26, %v1612_v27  ;;  %v3709_v7 = vpop.f32.mrb[45].mxu0  ;;  %v4061_v27 = vld [vmem:[%s5017_s2 + $0x20] sm:$0xff]  }
 0x820   :  { %v1615_v8 = vpop.f32.mrb[46].mxu0 }
 0x821   :  { %v1621_v10 = vmul.f32 0.044715, %v1613_v4  ;;  %v1616_v16 = vadd.f32 %v4676_v26, %v1615_v8  ;;  %v3710_v18 = vpop.f32.mrb[47].mxu0  ;;  %v1619_v46 = vmul.f32 0.5, %v1613_v4 }
 0x823   :  { %v1623_v19 = vmul.f32 %v1621_v10, %v1613_v4  ;;  %v1622_v11 = vmul.f32 0.044715, %v1616_v16  ;;  %v1620_v49 = vmul.f32 0.5, %v1616_v16 }
 0x825   :  { %v1625_v12 = vmul.f32 %v1623_v19, %v1613_v4  ;;  %v1624_v56 = vmul.f32 %v1622_v11, %v1616_v16  ;;  %v4063_v11 = vld [vmem:[%s5017_s2 + $0x40] sm:$0xff]  }
 0x826   :  { %v4680_v13 = vpop.f32.mrb[48].mxu0 }
 0x827   :  { %v1627_v14 = vadd.f32 %v1625_v12, %v1613_v4  ;;  %v1626_v15 = vmul.f32 %v1624_v56, %v1616_v16  ;;  %v3729_v58 = vpop.f32.mrb[49].mxu0  ;;  %v4064_v56 = vld [vmem:[%s5017_s2 + $0x48] sm:$0xff]  }
 0x828   :  { %v4682_v32 = vpop.f32.mrb[50].mxu0  ;;  %v4067_v58 = vld [vmem:[%s5017_s2 + $0x80] sm:$0xff]  }
 0x829   :  { %v1629_v35 = vmul.f32 0.7978846, %v1627_v14  ;;  %v1628_v61 = vadd.f32 %v1626_v15, %v1616_v16  ;;  %v2313_v9 = vpack.c.bf16 %v4682_v32, %v4680_v13  ;;  %v3730_v28 = vpop.f32.mrb[51].mxu0  ;;  %v4062_v16 = vld [vmem:[%s5017_s2 + $0x28] sm:$0xff]   ;;  %v4065_v14 = vld [vmem:[%s5017_s2 + $0x60] sm:$0xff]  }
 0x82a   :  { %v4066_v15 = vld [vmem:[%s5017_s2 + $0x68] sm:$0xff]  }
 0x82b   :  { %3987 = vtanh.f32 %v1629_v35  ;;  %v1630_v29 = vmul.f32 0.7978846, %v1628_v61  ;;  %v4068_v35 = vld [vmem:[%s5017_s2 + $0x88] sm:$0xff]   ;;  %v4069_v61 = vld [vmem:[%s5017_s2 + $0xa0] sm:$0xff]  }
 0x82c   :  { %v4070_v28 = vld [vmem:[%s5017_s2 + $0xa8] sm:$0xff]  }
 0x82d   :  { %3989 = vtanh.f32 %v1630_v29 }
 0x82e   :  { %v1896_v31 = vpop.f32.mrb[52].mxu0 }
 0x82f   :  { %v3737_v33 = vpop.f32.mrb[53].mxu0 }
 0x830   :  { %v1899_v36 = vpop.f32.mrb[54].mxu0 }
 0x831   :  { %v2314_v37 = vpack.c.bf16 %v1899_v36, %v1896_v31  ;;  %v3738_v40 = vpop.f32.mrb[55].mxu0 }
 0x835   :  { %v3988_v41 = vpop.eup %3987 }
 0x836   :  { %v1633_v43 = vadd.f32 1.0, %v3988_v41  ;;  %v4686_v44 = vpop.f32.mrb[56].mxu0 }
 0x837   :  { %v3990_v5 = vpop.eup %3989  ;;  %v3753_v45 = vpop.f32.mrb[57].mxu0 }
 0x838   :  { %v1634_v50 = vadd.f32 1.0, %v3990_v5  ;;  %v4688_v59 = vpop.f32.mrb[58].mxu0  ;;  %v1635_v0 = vmul.f32 %v1633_v43, %v1619_v46 }
 0x839   :  { %v2316_v60 = vpack.c.bf16 %v4688_v59, %v4686_v44  ;;  %v3754_v63 = vpop.f32.mrb[59].mxu0 }
 0x83a   :  { %v1636_v2 = vmul.f32 %v1634_v50, %v1620_v49 }
 0x83c   :  { %v1637_v3 = vpack.c.bf16 %v1636_v2, %v1635_v0 }
 0x83e   :  { %3720 = vmatmul.mubr.msk.bf16.vlgmr.msra.gmra.mrb[52].mxu1 %vm1666_vm9, %v1637_v3  ;;  %v2060_v51 = vpop.f32.mrb[60].mxu0 }
 0x83f   :  { %3740 = vmatpush3.bf16.msra.mxu1 %v4061_v27  ;;  %3743 = vmatprep.mubr.msk.bf16.mxu1 %vm4097_vm0, %v4096_v1  ;;  %v3769_v4 = vpop.f32.mrb[61].mxu0 }
 0x840   :  { %3741 = vmatprep.subr.bf16.mxu1 %v4096_v1  ;;  %v2063_v7 = vpop.f32.mrb[62].mxu0 }
 0x841   :  { %v2318_v8 = vpack.c.bf16 %v2063_v7, %v2060_v51  ;;  %v3770_v10 = vpop.f32.mrb[63].mxu0 }
 0x843   :  { %3742 = vmatpush3.bf16.msra.mxu1 %v4062_v16  ;;  %v2376_v18 = vsel %vm776_vm2, %v2318_v8, 0 }
 0x844   :  { %3755 = vmatprep.subr.bf16.mxu1 %v4096_v1  ;;  %3826 = vmatpush3.bf16.xpose.msra.mxu0 %v2376_v18 }
 0x845   :  { %3837 = vmatprep.subr.bf16.mxu0 %v4096_v1 }
 0x846   :  { %3744 = vmatmul.mubr.msk.bf16.vlgmr.msra.gmra.mrb[56].mxu1 %vm136_vm1, %v4575_v55  ;;  %v2142_v19 = vpop.f32.mrb[64].mxu0 }
 0x847   :  { %3756 = vmatpush3.bf16.msra.mxu1 %v4063_v11  ;;  %3759 = vmatprep.mubr.msk.bf16.mxu1 %vm4097_vm0, %v4096_v1  ;;  %v3785_v12 = vpop.f32.mrb[65].mxu0 }
 0x848   :  { %3757 = vmatprep.subr.bf16.mxu1 %v4096_v1  ;;  %v2145_v29 = vpop.f32.mrb[66].mxu0 }
 0x849   :  { %v2320_v31 = vpack.c.bf16 %v2145_v29, %v2142_v19  ;;  %v3786_v33 = vpop.f32.mrb[67].mxu0 }
 0x84b   :  { %3758 = vmatpush3.bf16.msra.mxu1 %v4064_v56  ;;  %3828 = vmatmul.mubr.msk.bf16.vlgmr.msra.gmra.mrb[76].mxu0 %vm776_vm2, %v2314_v37  ;;  %v2470_v36 = vsel %vm776_vm2, %v2320_v31, 0 }
 0x84c   :  { %3771 = vmatprep.subr.bf16.mxu1 %v4096_v1  ;;  %3839 = vmatprep.mubr.msk.bf16.mxu0 %vm4097_vm0, %v4096_v1 }
 0x84d   :  { %3838 = vmatpush3.bf16.xpose.msra.mxu0 %v2470_v36 }
 0x84e   :  { %3760 = vmatmul.mubr.msk.bf16.vlgmr.msra.gmra.mrb[60].mxu1 %vm136_vm1, %v4575_v55  ;;  %3849 = vmatprep.subr.bf16.mxu0 %v4096_v1 }
 0x84f   :  { %3772 = vmatpush3.bf16.msra.mxu1 %v4065_v14  ;;  %3775 = vmatprep.mubr.msk.bf16.mxu1 %vm4097_vm0, %v4096_v1 }
 0x850   :  { %3773 = vmatprep.subr.bf16.mxu1 %v4096_v1 }
 0x853   :  { %3774 = vmatpush3.bf16.msra.mxu1 %v4066_v15 }
 0x854   :  { %3787 = vmatprep.subr.bf16.mxu1 %v4096_v1  ;;  %3840 = vmatmul.mubr.msk.bf16.vlgmr.msra.gmra.mrb[80].mxu0 %vm776_vm2, %v2316_v60 }
 0x855   :  { %3851 = vmatprep.mubr.msk.bf16.mxu0 %vm4097_vm0, %v4096_v1 }
 0x856   :  { %3776 = vmatmul.mubr.msk.bf16.vlgmr.msra.gmra.mrb[64].mxu1 %vm136_vm1, %v4575_v55 }
 0x857   :  { %3788 = vmatpush3.bf16.msra.mxu1 %v4067_v58  ;;  %3791 = vmatprep.mubr.msk.bf16.mxu1 %vm4097_vm0, %v4096_v1 }
 0x858   :  { %3789 = vmatprep.subr.bf16.mxu1 %v4096_v1 }
 0x85b   :  { %3790 = vmatpush3.bf16.msra.mxu1 %v4068_v35 }
 0x85c   :  { %3803 = vmatprep.subr.bf16.mxu1 %v4096_v1 }
 0x85e   :  { %3792 = vmatmul.mubr.msk.bf16.vlgmr.msra.gmra.mrb[68].mxu1 %vm136_vm1, %v4575_v55 }
 0x85f   :  { %3804 = vmatpush3.bf16.msra.mxu1 %v4069_v61  ;;  %3807 = vmatprep.mubr.msk.bf16.mxu1 %vm4097_vm0, %v4096_v1 }
 0x860   :  { %3805 = vmatprep.subr.bf16.mxu1 %v4096_v1 }
 0x863   :  { %3806 = vmatpush3.bf16.msra.mxu1 %v4070_v28 }
 0x864   :  { %3819 = vmatprep.subr.bf16.mxu1 %v4096_v1 }
 0x866   :  { %3808 = vmatmul.mubr.msk.bf16.vlgmr.msra.gmra.mrb[72].mxu1 %vm136_vm1, %v4575_v55  ;;  %v2224_v55 = vpop.f32.mrb[68].mxu0 }
 0x867   :  { %3821 = vmatprep.mubr.msk.bf16.mxu1 %vm4097_vm0, %v4096_v1  ;;  %v3801_v37 = vpop.f32.mrb[69].mxu0 }
 0x868   :  { %v2227_v40 = vpop.f32.mrb[70].mxu0 }
 0x869   :  { %v2322_v41 = vpack.c.bf16 %v2227_v40, %v2224_v55  ;;  %v3802_v43 = vpop.f32.mrb[71].mxu0 }
 0x86a   :  { %v4768_v5 = vpop.f32.mrb[72].mxu0 }
 0x86b   :  { %v3817_v45 = vpop.f32.mrb[73].mxu0  ;;  %3850 = vmatpush3.bf16.msra.mxu0 %v2322_v41 }
 0x86c   :  { %v4770_v46 = vpop.f32.mrb[74].mxu0  ;;  %3861 = vmatprep.subr.bf16.mxu0 %v4096_v1 }
 0x86d   :  { %v2324_v44 = vpack.c.bf16 %v4770_v46, %v4768_v5  ;;  %v3818_v49 = vpop.f32.mrb[75].mxu0 }
 0x911   :  { %v4775_v50 = vpop.f32.mrb[52].mxu1 }
 0x912   :  { %v3721_v59 = vpop.f32.mrb[53].mxu1 }
 0x913   :  { %v4777_v60 = vpop.f32.mrb[54].mxu1  ;;  %v3332_v59 = vld [vmem:[%s5016_s1 + $0x48] sm:$0xf] }
 0x914   :  { %v3722_v63 = vpop.f32.mrb[55].mxu1  ;;  %vm1816_vm10 = vcmp.gt.bf16.partialorder %v3332_v59, 1056980736 }
 0x915   :  { %v3333_v63 = vld [vmem:[%s5016_s1 + $0x4c] sm:$0xf] }
 0x916   :  { %vm1817_vm11 = vcmp.gt.bf16.partialorder %v3333_v63, 1056980736 }
 0x919   :  { %v1937_v0 = vpop.f32.mrb[56].mxu1 }
 0x91a   :  { %v3745_v2 = vpop.f32.mrb[57].mxu1 }
 0x91b   :  { %v1940_v3 = vpop.f32.mrb[58].mxu1  ;;  %v3395_v2 = vld [vmem:[%s5016_s1 + $0x28] sm:$0xff]  }
 0x91c   :  { %v2315_v51 = vpack.c.bf16 %v1940_v3, %v1937_v0  ;;  %v3746_v27 = vpop.f32.mrb[59].mxu1  ;;  %v3396_v0 = vld [vmem:[%s5016_s1 + $0x30] sm:$0xff]   ;;  %v2529_v3 = vsel %vm1816_vm10, 65537, %v4098_v39 }
 0x91d   :  { %v3382_v27 = vunpack.c.l.bf16 %v3396_v0 }
 0x91e   :  { %v2412_v4 = vpop.f32.mrb[76].mxu0 }
 0x91f   :  { %v3829_v7 = vpop.f32.mrb[77].mxu0 }
 0x920   :  { %v2415_v8 = vpop.f32.mrb[78].mxu0  ;;  %v2515_v7 = vmul.f32 0.35355338, %v2412_v4 }
 0x921   :  { %v2019_v10 = vpop.f32.mrb[60].mxu1  ;;  %v3830_v16 = vpop.f32.mrb[79].mxu0 }
 0x922   :  { %v3761_v18 = vpop.f32.mrb[61].mxu1  ;;  %v3383_v16 = vunpack.c.h.bf16 %v3396_v0 }
 0x923   :  { %v2022_v19 = vpop.f32.mrb[62].mxu1  ;;  %v2516_v18 = vmul.f32 0.35355338, %v2415_v8  ;;  %v3397_v8 = vld [vmem:[%s5016_s1 + $0x38] sm:$0xff]  }
 0x924   :  { %v2317_v11 = vpack.c.bf16 %v2022_v19, %v2019_v10  ;;  %v3762_v12 = vpop.f32.mrb[63].mxu1  ;;  %v3378_v10 = vunpack.c.l.bf16 %v3395_v2 }
 0x926   :  { %v2329_v56 = vsel %vm776_vm2, %v2317_v11, 0  ;;  %v2531_v11 = vunpack.c.l.b16 %v2529_v3 }
 0x927   :  { %3820 = vmatpush3.bf16.xpose.msra.mxu1 %v2329_v56  ;;  %v2506_v41 = vpop.f32.mrb[80].mxu0 }
 0x928   :  { %3831 = vmatprep.subr.bf16.mxu1 %v4096_v1  ;;  %v3841_v43 = vpop.f32.mrb[81].mxu0  ;;  %vm4816_vm12 = vcmp.ne.s32.totalorder %v2531_v11, 0 }
 0x929   :  { %v2101_v14 = vpop.f32.mrb[64].mxu1  ;;  %v2509_v45 = vpop.f32.mrb[82].mxu0  ;;  %v2519_v43 = vmul.f32 0.35355338, %v2506_v41  ;;  %v3387_v41 = vunpack.c.h.bf16 %v3397_v8 }
 0x92a   :  { %v3777_v15 = vpop.f32.mrb[65].mxu1  ;;  %v3842_v49 = vpop.f32.mrb[83].mxu0 }
 0x92b   :  { %v2104_v58 = vpop.f32.mrb[66].mxu1  ;;  %v3386_v49 = vunpack.c.l.bf16 %v3397_v8 }
 0x92c   :  { %v2319_v35 = vpack.c.bf16 %v2104_v58, %v2101_v14  ;;  %v3778_v61 = vpop.f32.mrb[67].mxu1  ;;  %v3379_v14 = vunpack.c.h.bf16 %v3395_v2 }
 0x92d   :  { %v3398_v61 = vld [vmem:[%s5016_s1 + $0x40] sm:$0xff]  }
 0x92e   :  { %v2423_v28 = vsel %vm776_vm2, %v2319_v35, 0  ;;  %3822 = vmatmul.mubr.msk.bf16.vlgmr.msra.gmra.mrb[76].mxu1 %vm776_vm2, %v2313_v9  ;;  %v2523_v35 = vadd.f32 %v3382_v27, %v2515_v7  ;;  %v2520_v27 = vmul.f32 0.35355338, %v2509_v45 }
 0x92f   :  { %3832 = vmatpush3.bf16.xpose.msra.mxu1 %v2423_v28  ;;  %3833 = vmatprep.mubr.msk.bf16.mxu1 %vm4097_vm0, %v4096_v1 }
 0x930   :  { %3843 = vmatprep.subr.bf16.mxu1 %v4096_v1  ;;  %v2541_v63 = vsel %vm4816_vm12, -1e-09, %v2523_v35 }
 0x931   :  { %v2183_v29 = vpop.f32.mrb[68].mxu1 }
 0x932   :  { %v3793_v31 = vpop.f32.mrb[69].mxu1 }
 0x933   :  { %v2186_v33 = vpop.f32.mrb[70].mxu1  ;;  %v2524_v31 = vadd.f32 %v3383_v16, %v2516_v18  ;;  %v2553_v18 = vsel %vm999_vm6, %v2541_v63, -inf }
 0x934   :  { %v2321_v36 = vpack.c.bf16 %v2186_v33, %v2183_v29  ;;  %v3794_v55 = vpop.f32.mrb[71].mxu1 }
 0x936   :  { %3834 = vmatmul.mubr.msk.bf16.vlgmr.msra.gmra.mrb[80].mxu1 %vm776_vm2, %v2315_v51  ;;  %v2530_v51 = vsel %vm1817_vm11, 65537, %v4098_v39 }
 0x937   :  { %3844 = vmatpush3.bf16.msra.mxu1 %v2321_v36  ;;  %3845 = vmatprep.mubr.msk.bf16.mxu1 %vm4097_vm0, %v4096_v1  ;;  %v2532_v15 = vunpack.c.l.b16 %v2530_v51  ;;  %v3391_v51 = vunpack.c.h.bf16 %v3398_v61 }
 0x938   :  { %3855 = vmatprep.subr.bf16.mxu1 %v4096_v1 }
 0x939   :  { %v4793_v13 = vpop.f32.mrb[72].mxu1  ;;  %vm4825_vm13 = vcmp.ne.s32.totalorder %v2532_v15, 0  ;;  %v2528_v15 = vadd.f32 %v3391_v51, %v2520_v27 }
 0x93a   :  { %v3809_v32 = vpop.f32.mrb[73].mxu1  ;;  %v2542_v3 = vsel %vm4825_vm13, -1e-09, %v2524_v31 }
 0x93b   :  { %v4795_v9 = vpop.f32.mrb[74].mxu1  ;;  %v3390_v32 = vunpack.c.l.bf16 %v3398_v61 }
 0x93c   :  { %v2323_v37 = vpack.c.bf16 %v4795_v9, %v4793_v13  ;;  %v3810_v40 = vpop.f32.mrb[75].mxu1 }
 0xa01   :  { %v2365_v19 = vpop.f32.mrb[76].mxu1 }
 0xa02   :  { %v2513_v12 = vmul.f32 0.35355338, %v2365_v19  ;;  %v3823_v56 = vpop.f32.mrb[77].mxu1  ;;  %v2527_v19 = vadd.f32 %v3390_v32, %v2519_v43 }
 0xa03   :  { %v2368_v58 = vpop.f32.mrb[78].mxu1 }
 0xa04   :  { %v2521_v28 = vadd.f32 %v3378_v10, %v2513_v12  ;;  %v2514_v29 = vmul.f32 0.35355338, %v2368_v58  ;;  %v3824_v39 = vpop.f32.mrb[79].mxu1 }
 0xa05   :  { %v2546_v39 = vsel %vm4825_vm13, -1e-09, %v2528_v15 }
 0xa06   :  { %v2522_v33 = vadd.f32 %v3379_v14, %v2514_v29  ;;  %v2539_v36 = vsel %vm4816_vm12, -1e-09, %v2521_v28  ;;  %v2556_v14 = vsel %vm999_vm6, %v2542_v3, -inf  ;;  %v2545_v28 = vsel %vm4816_vm12, -1e-09, %v2527_v19 }
 0xa07   :  { %v2547_v40 = vsel %vm999_vm6, %v2539_v36, -inf  ;;  %v2565_v31 = vsel %vm999_vm6, %v2545_v28, -inf  ;;  %v2568_v8 = vsel %vm999_vm6, %v2546_v39, -inf }
 0xa08   :  { %2548 = vmax.xlane.f32.xlu0 %v2547_v40  ;;  %v2540_v59 = vsel %vm4825_vm13, -1e-09, %v2522_v33 }
 0xa09   :  { %v2459_v0 = vpop.f32.mrb[80].mxu1  ;;  %v2550_v2 = vsel %vm999_vm6, %v2540_v59, -inf }
 0xa0a   :  { %v2517_v7 = vmul.f32 0.35355338, %v2459_v0  ;;  %2551 = vmax.xlane.f32.xlu1 %v2550_v2  ;;  %v3835_v10 = vpop.f32.mrb[81].mxu1 }
 0xa0b   :  { %v2462_v16 = vpop.f32.mrb[82].mxu1 }
 0xa0c   :  { %v2525_v11 = vadd.f32 %v3386_v49, %v2517_v7  ;;  %v2518_v12 = vmul.f32 0.35355338, %v2462_v16  ;;  %2554 = vmax.xlane.f32.xlu0 %v2553_v18  ;;  %v3836_v56 = vpop.f32.mrb[83].mxu1 }
 0xa0e   :  { %v2526_v58 = vadd.f32 %v3387_v41, %v2518_v12  ;;  %2557 = vmax.xlane.f32.xlu1 %v2556_v14  ;;  %v2543_v45 = vsel %vm4816_vm12, -1e-09, %v2525_v11 }
 0xa0f   :  { %v2559_v35 = vsel %vm999_vm6, %v2543_v45, -inf }
 0xa10   :  { %2560 = vmax.xlane.f32.xlu0 %v2559_v35  ;;  %v2544_v61 = vsel %vm4825_vm13, -1e-09, %v2526_v58 }
 0xa11   :  { %v2562_v29 = vsel %vm999_vm6, %v2544_v61, -inf }
 0xa12   :  { %2563 = vmax.xlane.f32.xlu1 %v2562_v29 }
 0xa14   :  { %2566 = vmax.xlane.f32.xlu0 %v2565_v31 }
 0xa16   :  { %2569 = vmax.xlane.f32.xlu1 %v2568_v8 }
 0xa95   :  { %v2549_v33 = vpop.xlane.xlu0 %2548 }
 0xa96   :  { %v2571_v32 = vsub.f32 %v2539_v36, %v2549_v33 }
 0xa97   :  { %v2552_v40 = vpop.xlane.xlu1 %2551 }
 0xa98   :  { %v2579_v43 = vmul.f32 1.442695, %v2571_v32  ;;  %v2572_v49 = vsub.f32 %v2540_v59, %v2552_v40 }
 0xa99   :  { %v2555_v0 = vpop.xlane.xlu0 %2554 }
 0xa9a   :  { %3991 = vpow2.f32 %v2579_v43  ;;  %v2581_v4 = vmul.f32 1.442695, %v2572_v49  ;;  %v2573_v2 = vsub.f32 %v2541_v63, %v2555_v0 }
 0xa9b   :  { %v2558_v51 = vpop.xlane.xlu1 %2557 }
 0xa9c   :  { %3993 = vpow2.f32 %v2581_v4  ;;  %v2583_v27 = vmul.f32 1.442695, %v2573_v2  ;;  %v2574_v55 = vsub.f32 %v2542_v3, %v2558_v51 }
 0xa9d   :  { %v2561_v7 = vpop.xlane.xlu0 %2560 }
 0xa9e   :  { %3995 = vpow2.f32 %v2583_v27  ;;  %v2585_v10 = vmul.f32 1.442695, %v2574_v55  ;;  %v2575_v41 = vsub.f32 %v2543_v45, %v2561_v7 }
 0xa9f   :  { %v2564_v16 = vpop.xlane.xlu1 %2563 }
 0xaa0   :  { %3997 = vpow2.f32 %v2585_v10  ;;  %v2587_v18 = vmul.f32 1.442695, %v2575_v41  ;;  %v2576_v19 = vsub.f32 %v2544_v61, %v2564_v16 }
 0xaa1   :  { %v2567_v36 = vpop.xlane.xlu0 %2566 }
 0xaa2   :  { %3999 = vpow2.f32 %v2587_v18  ;;  %v2589_v11 = vmul.f32 1.442695, %v2576_v19  ;;  %v2577_v59 = vsub.f32 %v2545_v28, %v2567_v36 }
 0xaa3   :  { %v2570_v12 = vpop.xlane.xlu1 %2569 }
 0xaa4   :  { %v3992_v56 = vpop.eup %3991  ;;  %4001 = vpow2.f32 %v2589_v11  ;;  %v2591_v63 = vmul.f32 1.442695, %v2577_v59  ;;  %v2578_v14 = vsub.f32 %v2546_v39, %v2570_v12 }
 0xaa5   :  { %v2595_v15 = vsel %vm999_vm6, %v3992_v56, 0.0 }
 0xaa6   :  { %v3994_v3 = vpop.eup %3993  ;;  %4003 = vpow2.f32 %v2591_v63  ;;  %v2593_v58 = vmul.f32 1.442695, %v2578_v14  ;;  %2596 = vadd.xlane.f32.xlu0 %v2595_v15 }
 0xaa7   :  { %v2598_v45 = vsel %vm999_vm6, %v3994_v3, 0.0 }
 0xaa8   :  { %v3996_v35 = vpop.eup %3995  ;;  %4005 = vpow2.f32 %v2593_v58  ;;  %2599 = vadd.xlane.f32.xlu1 %v2598_v45 }
 0xaa9   :  { %v2601_v61 = vsel %vm999_vm6, %v3996_v35, 0.0 }
 0xaaa   :  { %v3998_v29 = vpop.eup %3997  ;;  %2602 = vadd.xlane.f32.xlu0 %v2601_v61 }
 0xaab   :  { %v2604_v28 = vsel %vm999_vm6, %v3998_v29, 0.0 }
 0xaac   :  { %v4000_v31 = vpop.eup %3999  ;;  %2605 = vadd.xlane.f32.xlu1 %v2604_v28 }
 0xaad   :  { %v2607_v39 = vsel %vm999_vm6, %v4000_v31, 0.0 }
 0xaae   :  { %v4002_v8 = vpop.eup %4001  ;;  %2608 = vadd.xlane.f32.xlu0 %v2607_v39 }
 0xaaf   :  { %v2610_v33 = vsel %vm999_vm6, %v4002_v8, 0.0 }
 0xab0   :  { %v4004_v32 = vpop.eup %4003  ;;  %2611 = vadd.xlane.f32.xlu1 %v2610_v33 }
 0xab1   :  { %v2613_v40 = vsel %vm999_vm6, %v4004_v32, 0.0 }
 0xab2   :  { %v4006_v43 = vpop.eup %4005  ;;  %2614 = vadd.xlane.f32.xlu0 %v2613_v40 }
 0xab3   :  { %v2616_v49 = vsel %vm999_vm6, %v4006_v43, 0.0 }
 0xab4   :  { %2617 = vadd.xlane.f32.xlu1 %v2616_v49 }
 0xb33   :  { %v2597_v0 = vpop.xlane.xlu0 %2596 }
 0xb34   :  { %4007 = vrcp.f32 %v2597_v0 }
 0xb35   :  { %v2600_v4 = vpop.xlane.xlu1 %2599 }
 0xb36   :  { %4009 = vrcp.f32 %v2600_v4 }
 0xb37   :  { %v2603_v2 = vpop.xlane.xlu0 %2602 }
 0xb38   :  { %4011 = vrcp.f32 %v2603_v2 }
 0xb39   :  { %v2606_v51 = vpop.xlane.xlu1 %2605 }
 0xb3a   :  { %4013 = vrcp.f32 %v2606_v51 }
 0xb3b   :  { %v2609_v27 = vpop.xlane.xlu0 %2608 }
 0xb3c   :  { %4015 = vrcp.f32 %v2609_v27 }
 0xb3d   :  { %v2612_v55 = vpop.xlane.xlu1 %2611 }
 0xb3e   :  { %v4008_v7 = vpop.eup %4007  ;;  %4017 = vrcp.f32 %v2612_v55 }
 0xb3f   :  { %v2615_v10 = vpop.xlane.xlu0 %2614  ;;  %v2627_v16 = vmul.f32 %v4008_v7, %v3992_v56 }
 0xb40   :  { %v4010_v41 = vpop.eup %4009  ;;  %4019 = vrcp.f32 %v2615_v10 }
 0xb41   :  { %v2628_v18 = vmul.f32 %v4010_v41, %v3994_v3  ;;  %v2618_v19 = vpop.xlane.xlu1 %2617 }
 0xb42   :  { %v4012_v36 = vpop.eup %4011  ;;  %4021 = vrcp.f32 %v2618_v19 }
 0xb43   :  { %v2635_v11 = vpack.c.bf16 %v2628_v18, %v2627_v16  ;;  %v2629_v12 = vmul.f32 %v4012_v36, %v3996_v35 }
 0xb44   :  { %v4014_v59 = vpop.eup %4013 }
 0xb45   :  { %v2630_v63 = vmul.f32 %v4014_v59, %v3998_v29  ;;  %3846 = vmatmul.mubr.msk.bf16.vlgmr.msra.gmra.mrb[84].mxu1 %vm999_vm6, %v2635_v11 }
 0xb46   :  { %v4016_v14 = vpop.eup %4015  ;;  %3856 = vmatpush3.bf16.msra.mxu1 %v2323_v37  ;;  %3857 = vmatprep.mubr.msk.bf16.mxu1 %vm4097_vm0, %v4096_v1 }
 0xb47   :  { %v2636_v15 = vpack.c.bf16 %v2630_v63, %v2629_v12  ;;  %3867 = vmatprep.subr.bf16.mxu1 %v4096_v1  ;;  %v2631_v3 = vmul.f32 %v4016_v14, %v4000_v31 }
 0xb48   :  { %v4018_v56 = vpop.eup %4017 }
 0xb49   :  { %v2632_v58 = vmul.f32 %v4018_v56, %v4002_v8  ;;  %3852 = vmatmul.mubr.msk.bf16.vlgmr.msra.gmra.mrb[84].mxu0 %vm999_vm6, %v2636_v15 }
 0xb4a   :  { %v4020_v45 = vpop.eup %4019  ;;  %3862 = vmatpush3.bf16.msra.mxu0 %v2324_v44  ;;  %3863 = vmatprep.mubr.msk.bf16.mxu0 %vm4097_vm0, %v4096_v1 }
 0xb4b   :  { %v2637_v13 = vpack.c.bf16 %v2632_v58, %v2631_v3  ;;  %3873 = vmatprep.subr.bf16.mxu0 %v4096_v1  ;;  %v2633_v37 = vmul.f32 %v4020_v45, %v4004_v32 }
 0xb4c   :  { %v4022_v9 = vpop.eup %4021 }
 0xb4d   :  { %v2634_v35 = vmul.f32 %v4022_v9, %v4006_v43  ;;  %3858 = vmatmul.mubr.msk.bf16.vlgmr.msra.gmra.mrb[88].mxu1 %vm999_vm6, %v2637_v13 }
 0xb4e   :  { %3868 = vmatpush3.bf16.msra.mxu1 %v4447_v34  ;;  %3869 = vmatprep.mubr.msk.bf16.mxu1 %vm4097_vm0, %v4096_v1 }
 0xb4f   :  { %v2638_v61 = vpack.c.bf16 %v2634_v35, %v2633_v37  ;;  %3879 = vmatprep.subr.bf16.mxu1 %v4096_v1 }
 0xb51   :  { %3864 = vmatmul.mubr.msk.bf16.vlgmr.msra.gmra.mrb[88].mxu0 %vm999_vm6, %v2638_v61 }
 0xb52   :  { %3874 = vmatpush3.bf16.msra.mxu0 %v4455_v17  ;;  %3875 = vmatprep.mubr.msk.bf16.mxu0 %vm4097_vm0, %v4096_v1 }
 0xb53   :  { %3885 = vmatprep.subr.bf16.mxu0 %v4096_v1 }
 0xc18   :  { %v2676_v5 = vpop.f32.mrb[84].mxu1 }
 0xc19   :  { %v3847_v46 = vpop.f32.mrb[85].mxu1 }
 0xc1a   :  { %v2679_v44 = vpop.f32.mrb[86].mxu1 }
 0xc1b   :  { %v2815_v29 = vpack.c.bf16 %v2679_v44, %v2676_v5  ;;  %v3848_v34 = vpop.f32.mrb[87].mxu1 }
 0xc1c   :  { %v2720_v28 = vpop.f32.mrb[84].mxu0 }
 0xc1d   :  { %v3853_v31 = vpop.f32.mrb[85].mxu0  ;;  %3870 = vmatmul.mubr.msk.bf16.vlgmr.msra.gmra.mrb[92].mxu1 %vm776_vm2, %v2815_v29 }
 0xc1e   :  { %v2723_v39 = vpop.f32.mrb[86].mxu0  ;;  %3880 = vmatpush3.bf16.msra.mxu1 %v4463_v30  ;;  %3881 = vmatprep.mubr.msk.bf16.mxu1 %vm4097_vm0, %v4096_v1 }
 0xc1f   :  { %v2816_v17 = vpack.c.bf16 %v2723_v39, %v2720_v28  ;;  %v3854_v8 = vpop.f32.mrb[87].mxu0  ;;  %3891 = vmatprep.subr.bf16.mxu1 %v4096_v1 }
 0xc20   :  { %v2764_v33 = vpop.f32.mrb[88].mxu1 }
 0xc21   :  { %v3859_v32 = vpop.f32.mrb[89].mxu1  ;;  %3876 = vmatmul.mubr.msk.bf16.vlgmr.msra.gmra.mrb[92].mxu0 %vm776_vm2, %v2816_v17 }
 0xc22   :  { %v2767_v40 = vpop.f32.mrb[90].mxu1  ;;  %3886 = vmatpush3.bf16.msra.mxu0 %v4474_v42  ;;  %3887 = vmatprep.mubr.msk.bf16.mxu0 %vm4097_vm0, %v4096_v1 }
 0xc23   :  { %v2817_v43 = vpack.c.bf16 %v2767_v40, %v2764_v33  ;;  %v3860_v49 = vpop.f32.mrb[91].mxu1  ;;  %3899 = vmatprep.subr.bf16.mxu0 %v4096_v1 }
 0xc24   :  { %v2808_v30 = vpop.f32.mrb[88].mxu0 }
 0xc25   :  { %v3865_v0 = vpop.f32.mrb[89].mxu0  ;;  %3882 = vmatmul.mubr.msk.bf16.vlgmr.msra.gmra.mrb[96].mxu1 %vm776_vm2, %v2817_v43 }
 0xc26   :  { %v2811_v4 = vpop.f32.mrb[90].mxu0  ;;  %3892 = vmatpush3.bf16.msra.mxu1 %v4529_v22  ;;  %3895 = vmatprep.mubr.msk.bf16.mxu1 %vm4097_vm0, %v4096_v1 }
 0xc27   :  { %v2818_v2 = vpack.c.bf16 %v2811_v4, %v2808_v30  ;;  %v3866_v51 = vpop.f32.mrb[91].mxu0  ;;  %3893 = vmatprep.subr.bf16.mxu1 %v4096_v1 }
 0xc29   :  { %3888 = vmatmul.mubr.msk.bf16.vlgmr.msra.gmra.mrb[96].mxu0 %vm776_vm2, %v2818_v2 }
 0xc2a   :  { %3894 = vmatpush3.bf16.msra.mxu1 %v4535_v23  ;;  %3900 = vmatpush3.bf16.msra.mxu0 %v4648_v20 }
 0xc2b   :  { %3901 = vmatprep.subr.bf16.mxu0 %v4096_v1  ;;  %3907 = vmatprep.mubr.msk.bf16.mxu0 %vm4097_vm0, %v4096_v1 }
 0xc2e   :  { %3902 = vmatpush3.bf16.msra.mxu0 %v4654_v21 }
 0xc2f   :  { %3903 = vmatprep.subr.bf16.mxu0 %v4096_v1 }
 0xc32   :  { %3904 = vmatpush3.bf16.msra.mxu0 %v4661_v24 }
 0xc33   :  { %3905 = vmatprep.subr.bf16.mxu0 %v4096_v1 }
 0xc36   :  { %3906 = vmatpush3.bf16.msra.mxu0 %v4668_v25 }
 0xcf0   :  { %v2856_v42 = vpop.f32.mrb[92].mxu1 }
 0xcf1   :  { %v3871_v22 = vpop.f32.mrb[93].mxu1  ;;  %v2995_v55 = vsel %vm136_vm1, %v2856_v42, 0.0 }
 0xcf2   :  { %v2859_v23 = vpop.f32.mrb[94].mxu1 }
 0xcf3   :  { %v3872_v27 = vpop.f32.mrb[95].mxu1  ;;  %v3002_v16 = vsel %vm136_vm1, %v2859_v23, 0.0 }
 0xcf4   :  { %v2900_v20 = vpop.f32.mrb[92].mxu0 }
 0xcf5   :  { %v2996_v7 = vsel %vm136_vm1, %v2900_v20, 0.0  ;;  %v3877_v10 = vpop.f32.mrb[93].mxu0 }
 0xcf6   :  { %v2997_v41 = vadd.f32 %v2996_v7, %v2995_v55  ;;  %v2903_v21 = vpop.f32.mrb[94].mxu0 }
 0xcf7   :  { %v3003_v24 = vsel %vm136_vm1, %v2903_v21, 0.0  ;;  %v3878_v18 = vpop.f32.mrb[95].mxu0 }
 0xcf8   :  { %v3004_v1 = vadd.f32 %v3003_v24, %v3002_v16  ;;  %v2944_v19 = vpop.f32.mrb[96].mxu1  ;;  %v4934_v16 = vld [vmem:[%s5022_s7 + $0x8] ss:$0 sm:$0xff] }
 0xcf9   :  { %v2998_v25 = vsel %vm136_vm1, %v2944_v19, 0.0  ;;  %v3883_v36 = vpop.f32.mrb[97].mxu1 }
 0xcfa   :  { %v2999_v11 = vadd.f32 %v2998_v25, %v2997_v41  ;;  %v2947_v59 = vpop.f32.mrb[98].mxu1 }
 0xcfb   :  { %v3005_v12 = vsel %vm136_vm1, %v2947_v59, 0.0  ;;  %v3884_v63 = vpop.f32.mrb[99].mxu1 }
 0xcfc   :  { %v3006_v14 = vadd.f32 %v3005_v12, %v3004_v1  ;;  %v2988_v15 = vpop.f32.mrb[96].mxu0 }
 0xcfd   :  { %v3000_v56 = vsel %vm136_vm1, %v2988_v15, 0.0  ;;  %v3889_v3 = vpop.f32.mrb[97].mxu0 }
 0xcfe   :  { %v3001_v58 = vadd.f32 %v3000_v56, %v2999_v11  ;;  %v2991_v45 = vpop.f32.mrb[98].mxu0 }
 0xcff   :  { %v3007_v13 = vsel %vm136_vm1, %v2991_v45, 0.0  ;;  %v3890_v9 = vpop.f32.mrb[99].mxu0 }
 0xd00   :  { %v3008_v37 = vadd.f32 %v3007_v13, %v3006_v14  ;;  %v3009_v35 = vadd.f32 %v4565_v53, %v3001_v58 }
 0xd02   :  { %v3011_v61 = vsel %vm136_vm1, %v3009_v35, 0.0  ;;  %v3010_v5 = vadd.f32 %v4570_v54, %v3008_v37 }
 0xd03   :  { %3012 = vadd.xlane.f32.xlu0 %v3011_v61 }
 0xd04   :  { %v3014_v46 = vsel %vm136_vm1, %v3010_v5, 0.0 }
 0xd05   :  { %3015 = vadd.xlane.f32.xlu1 %v3014_v46 }
 0xd90   :  { %v3013_v44 = vpop.xlane.xlu0 %3012 }
 0xd91   :  { %v3017_v29 = vmul.f32 0.03125, %v3013_v44 }
 0xd92   :  { %v3016_v34 = vpop.xlane.xlu1 %3015 }
 0xd93   :  { %v3019_v28 = vsub.f32 %v3009_v35, %v3017_v29  ;;  %v3018_v31 = vmul.f32 0.03125, %v3016_v34 }
 0xd95   :  { %v3020_v39 = vsub.f32 %v3010_v5, %v3018_v31  ;;  %v3021_v17 = vmul.f32 %v3019_v28, %v3019_v28 }
 0xd97   :  { %v3023_v8 = vsel %vm136_vm1, %v3021_v17, 0.0  ;;  %v3022_v33 = vmul.f32 %v3020_v39, %v3020_v39 }
 0xd98   :  { %3024 = vadd.xlane.f32.xlu0 %v3023_v8 }
 0xd99   :  { %v3026_v32 = vsel %vm136_vm1, %v3022_v33, 0.0 }
 0xd9a   :  { %3027 = vadd.xlane.f32.xlu1 %v3026_v32 }
 0xe25   :  { %v3025_v40 = vpop.xlane.xlu0 %3024 }
 0xe26   :  { %v3029_v43 = vmul.f32 0.03125, %v3025_v40 }
 0xe27   :  { %v3028_v49 = vpop.xlane.xlu1 %3027 }
 0xe28   :  { %v3031_v30 = vadd.f32 1e-06, %v3029_v43  ;;  %v3030_v0 = vmul.f32 0.03125, %v3028_v49 }
 0xe2a   :  { %4023 = vrsqrt.f32 %v3031_v30  ;;  %v3032_v4 = vadd.f32 1e-06, %v3030_v0 }
 0xe2c   :  { %4025 = vrsqrt.f32 %v3032_v4 }
 0xe34   :  { %v4024_v2 = vpop.eup %4023 }
 0xe35   :  { %v3035_v51 = vmul.f32 %v4024_v2, %v3019_v28 }
 0xe36   :  { %v4026_v42 = vpop.eup %4025 }
 0xe37   :  { %v3037_v22 = vmul.f32 %v3035_v51, %v4508_v57  ;;  %v3036_v23 = vmul.f32 %v4026_v42, %v3020_v39 }
 0xe39   :  { %v3039_v27 = vadd.f32 %v3037_v22, %v4510_v62  ;;  %v3038_v20 = vmul.f32 %v3036_v23, %v4508_v57 }
 0xe3b   :  { %v3041_v55 = vadd.f32 %v4565_v53, %v3039_v27  ;;  %v3040_v7 = vadd.f32 %v3038_v20, %v4510_v62  ;;  %v4938_v53 = vadd.f32 %v4934_v16, %v4775_v50 }
 0xe3d   :  { %v3043_v10 = vsel %vm136_vm1, %v3041_v55, 0.0  ;;  %v3042_v41 = vadd.f32 %v4570_v54, %v3040_v7  ;;  %v4942_v54 = vadd.f32 %v4934_v16, %v4777_v60  ;;  %v1711_v59 = vadd.f32 %v4938_v53, %v4549_v47 }
 0xe3e   :  { %3044 = vadd.xlane.f32.xlu0 %v3043_v10 }
 0xe3f   :  { %v3046_v21 = vsel %vm136_vm1, %v3042_v41, 0.0  ;;  %v1712_v50 = vadd.f32 %v4942_v54, %v4552_v48  ;;  %v1713_v63 = vsel %vm136_vm1, %v1711_v59, 0.0 }
 0xe40   :  { %3047 = vadd.xlane.f32.xlu1 %v3046_v21 }
 0xe41   :  { %v1716_v60 = vsel %vm136_vm1, %v1712_v50, 0.0 }
 0xecb   :  { %v3045_v24 = vpop.xlane.xlu0 %3044 }
 0xecc   :  { %v3049_v18 = vmul.f32 0.03125, %v3045_v24 }
 0xecd   :  { %v3048_v57 = vpop.xlane.xlu1 %3047 }
 0xece   :  { %v3051_v62 = vsub.f32 %v3041_v55, %v3049_v18  ;;  %v3050_v1 = vmul.f32 0.03125, %v3048_v57 }
 0xed0   :  { %v3052_v19 = vsub.f32 %v3042_v41, %v3050_v1  ;;  %v3053_v25 = vmul.f32 %v3051_v62, %v3051_v62 }
 0xed2   :  { %v3055_v36 = vsel %vm136_vm1, %v3053_v25, 0.0  ;;  %v3054_v11 = vmul.f32 %v3052_v19, %v3052_v19 }
 0xed3   :  { %3056 = vadd.xlane.f32.xlu0 %v3055_v36 }
 0xed4   :  { %v3058_v12 = vsel %vm136_vm1, %v3054_v11, 0.0 }
 0xed5   :  { %3059 = vadd.xlane.f32.xlu1 %v3058_v12 }
 0xed7   :  { %1714 = vadd.xlane.f32.xlu0 %v1713_v63 }
 0xed9   :  { %1717 = vadd.xlane.f32.xlu1 %v1716_v60 }
 0xf60   :  { %v3057_v14 = vpop.xlane.xlu0 %3056 }
 0xf61   :  { %v3061_v15 = vmul.f32 0.03125, %v3057_v14 }
 0xf62   :  { %v3060_v56 = vpop.xlane.xlu1 %3059 }
 0xf63   :  { %v3063_v3 = vadd.f32 1e-05, %v3061_v15  ;;  %v3062_v58 = vmul.f32 0.03125, %v3060_v56 }
 0xf64   :  { %v1715_v20 = vpop.xlane.xlu0 %1714 }
 0xf65   :  { %4027 = vrsqrt.f32 %v3063_v3  ;;  %v3064_v47 = vadd.f32 1e-05, %v3062_v58  ;;  %v1719_v7 = vmul.f32 0.03125, %v1715_v20 }
 0xf66   :  { %v1718_v55 = vpop.xlane.xlu1 %1717 }
 0xf67   :  { %4029 = vrsqrt.f32 %v3064_v47  ;;  %v1720_v10 = vmul.f32 0.03125, %v1718_v55  ;;  %v1721_v21 = vsub.f32 %v1711_v59, %v1719_v7 }
 0xf69   :  { %v1723_v12 = vmul.f32 %v1721_v21, %v1721_v21 }
 0xf6b   :  { %v1725_v60 = vsel %vm136_vm1, %v1723_v12, 0.0 }
 0xf6f   :  { %v4028_v45 = vpop.eup %4027 }
 0xf70   :  { %v3067_v13 = vmul.f32 %v4028_v45, %v3051_v62  ;;  %v1722_v62 = vsub.f32 %v1712_v50, %v1720_v10 }
 0xf71   :  { %v4030_v9 = vpop.eup %4029 }
 0xf72   :  { %v3069_v48 = vmul.f32 %v3067_v13, %v4541_v38  ;;  %v3068_v37 = vmul.f32 %v4030_v9, %v3052_v19  ;;  %v1724_v63 = vmul.f32 %v1722_v62, %v1722_v62 }
 0xf74   :  { %v3070_v35 = vmul.f32 %v3068_v37, %v4541_v38  ;;  %v3071_v61 = vadd.f32 %v3069_v48, %v4545_v6  ;;  %v1728_v50 = vsel %vm136_vm1, %v1724_v63, 0.0 }
 0xf76   :  { %v3072_v5 = vadd.f32 %v3070_v35, %v4545_v6 }
 0xf78   :  { %v3073_v46 = vpack.c.bf16 %v3072_v5, %v3071_v61 }
 0xf7a   :  { %3896 = vmatmul.mubr.msk.bf16.vlgmr.msra.gmra.mrb[100].mxu1 %vm136_vm1, %v3073_v46 }
0x104d   :  { %v3111_v44 = vpop.f32.mrb[100].mxu1 }
0x104e   :  { %v3112_v29 = vadd.f32 %v4676_v26, %v3111_v44  ;;  %v3897_v34 = vpop.f32.mrb[101].mxu1  ;;  %v1741_v44 = vsub.s32 4, %v4501_v52 }
0x104f   :  { %v3114_v28 = vpop.f32.mrb[102].mxu1  ;;  %v4979_v34 = vld [vmem:[%s5022_s7] sm:$0xff]  ;;  %s4099_s7 = smov [#allocation2]  }
0x1050   :  { %v3120_v31 = vmul.f32 0.044715, %v3112_v29  ;;  %v3115_v39 = vadd.f32 %v4676_v26, %v3114_v28  ;;  %v3898_v17 = vpop.f32.mrb[103].mxu1  ;;  %v3118_v51 = vmul.f32 0.5, %v3112_v29  ;;  %v1742_v28 = vrot.slane %v4979_v34, %v1741_v44  ;;  %s3253_s0 = sshll.u32 %s4099_s7, 4  ;;  %s3254_s0 = int_to_ptr.vmem [resolvable:$true] %s3253_s0 }
0x1051   :  { %s4072_s29 = scalar_lea.vmem %s3254_s0, 512  ;;  %p4077_p1 = scmp.lt.s32.totalorder %s3254_s0, %s3254_s0 }
0x1052   :  { %v3122_v8 = vmul.f32 %v3120_v31, %v3112_v29  ;;  %v3121_v33 = vmul.f32 0.044715, %v3115_v39  ;;  %v3119_v42 = vmul.f32 0.5, %v3115_v39  ;;  %p4073_p0 = scmp.ne.s32.totalorder %s3254_s0, %s4072_s29  ;;  %p4078_p2 = scmp.lt.s32.totalorder %s4072_s29, %s4072_s29 }
0x1054   :  { %v3124_v32 = vmul.f32 %v3122_v8, %v3112_v29  ;;  %v3123_v38 = vmul.f32 %v3121_v33, %v3115_v39  ;;  %p4079_p3 = por %p4078_p2, %p4077_p1 }
0x1056   :  { %v3126_v40 = vadd.f32 %v3124_v32, %v3112_v29  ;;  %v3125_v43 = vmul.f32 %v3123_v38, %v3115_v39  ;;  %v1747_v29 = vsub.s32 5, %v4501_v52  ;;  %p4080_p4 = pnand %p4079_p3, %p4073_p0 }
0x1058   :  { %v3128_v49 = vmul.f32 0.7978846, %v3126_v40  ;;  %v3127_v6 = vadd.f32 %v3125_v43, %v3115_v39  ;;  %v1748_v17 = vrot.slane %v4979_v34, %v1747_v29 }
0x105a   :  { %4031 = vtanh.f32 %v3128_v49  ;;  %v3129_v30 = vmul.f32 0.7978846, %v3127_v6 }
0x105c   :  { %4033 = vtanh.f32 %v3129_v30 }
0x1064   :  { %v4032_v0 = vpop.eup %4031 }
0x1065   :  { %v3132_v4 = vadd.f32 1.0, %v4032_v0 }
0x1066   :  { %v4034_v2 = vpop.eup %4033 }
0x1067   :  { %v3133_v22 = vadd.f32 1.0, %v4034_v2  ;;  %v3134_v23 = vmul.f32 %v3132_v4, %v3118_v51 }
0x1069   :  { %v3135_v26 = vmul.f32 %v3133_v22, %v3119_v42 }
0x106b   :  { %v3136_v27 = vpack.c.bf16 %v3135_v26, %v3134_v23 }
0x106d   :  { %3908 = vmatmul.mubr.msk.bf16.vlgmr.msra.gmra.mrb[100].mxu0 %vm1666_vm9, %v3136_v27 }
0x1140   :  { %v3174_v41 = vpop.f32.mrb[100].mxu0 }
0x1141   :  { %v4961_v24 = vadd.f32 %v4934_v16, %v3174_v41  ;;  %v3909_v18 = vpop.f32.mrb[101].mxu0 }
0x1142   :  { %v3177_v57 = vpop.f32.mrb[102].mxu0 }
0x1143   :  { %v4964_v1 = vadd.f32 %v4934_v16, %v3177_v57  ;;  %v3910_v19 = vpop.f32.mrb[103].mxu0  ;;  %v3181_v25 = vadd.f32 %v4961_v24, %v3071_v61 }
0x1145   :  { %v3183_v36 = vsel %vm136_vm1, %v3181_v25, 0.0  ;;  %v3182_v11 = vadd.f32 %v4964_v1, %v3072_v5 }
0x1146   :  { %3184 = vadd.xlane.f32.xlu0 %v3183_v36 }
0x1147   :  { %v3186_v59 = vsel %vm136_vm1, %v3182_v11, 0.0 }
0x1148   :  { %3187 = vadd.xlane.f32.xlu1 %v3186_v59 }
0x114a   :  { %1726 = vadd.xlane.f32.xlu0 %v1725_v60 }
0x114c   :  { %1729 = vadd.xlane.f32.xlu1 %v1728_v50 }
0x11d3   :  { %v3185_v16 = vpop.xlane.xlu0 %3184 }
0x11d4   :  { %v3189_v14 = vmul.f32 0.03125, %v3185_v16 }
0x11d5   :  { %v3188_v15 = vpop.xlane.xlu1 %3187 }
0x11d6   :  { %v3191_v56 = vsub.f32 %v3181_v25, %v3189_v14  ;;  %v3190_v3 = vmul.f32 0.03125, %v3188_v15 }
0x11d7   :  { %v1727_v58 = vpop.xlane.xlu0 %1726 }
0x11d8   :  { %v3192_v47 = vsub.f32 %v3182_v11, %v3190_v3  ;;  %v1731_v45 = vmul.f32 0.03125, %v1727_v58  ;;  %v3193_v13 = vmul.f32 %v3191_v56, %v3191_v56 }
0x11d9   :  { %v1730_v9 = vpop.xlane.xlu1 %1729 }
0x11da   :  { %v1733_v48 = vadd.f32 1e-05, %v1731_v45  ;;  %v1732_v37 = vmul.f32 0.03125, %v1730_v9  ;;  %v3195_v35 = vsel %vm136_vm1, %v3193_v13, 0.0  ;;  %v3194_v61 = vmul.f32 %v3192_v47, %v3192_v47 }
0x11db   :  { %3196 = vadd.xlane.f32.xlu0 %v3195_v35 }
0x11dc   :  { %4035 = vrsqrt.f32 %v1733_v48  ;;  %v1734_v5 = vadd.f32 1e-05, %v1732_v37  ;;  %v3198_v46 = vsel %vm136_vm1, %v3194_v61, 0.0 }
0x11dd   :  { %3199 = vadd.xlane.f32.xlu1 %v3198_v46  ;;  %v1787_v46 = vsub.s32 7, %v4501_v52 }
0x11de   :  { %4037 = vrsqrt.f32 %v1734_v5  ;;  %v1781_v5 = vsub.s32 6, %v4501_v52 }
0x11e0   :  { %v1782_v44 = vrot.slane %v4979_v34, %v1781_v5 }
0x11e6   :  { %v4036_v31 = vpop.eup %4035 }
0x11e7   :  { %v1737_v39 = vmul.f32 %v4036_v31, %v1721_v21 }
0x11e8   :  { %v4038_v8 = vpop.eup %4037 }
0x11e9   :  { %v1743_v33 = vmul.f32 %v1742_v28, %v1737_v39  ;;  %v1738_v32 = vmul.f32 %v4038_v8, %v1722_v62 }
0x11eb   :  { %v1749_v38 = vadd.f32 %v1748_v17, %v1743_v33  ;;  %v1744_v40 = vmul.f32 %v1742_v28, %v1738_v32 }
0x11ed   :  { %v1751_v43 = vadd.f32 %v1749_v38, %v4938_v53  ;;  %v1750_v49 = vadd.f32 %v1748_v17, %v1744_v40 }
0x11ef   :  { %v1753_v6 = vsel %vm136_vm1, %v1751_v43, 0.0  ;;  %v1752_v30 = vadd.f32 %v1750_v49, %v4942_v54 }
0x11f0   :  { %1754 = vadd.xlane.f32.xlu0 %v1753_v6 }
0x11f1   :  { %v1756_v0 = vsel %vm136_vm1, %v1752_v30, 0.0 }
0x11f2   :  { %1757 = vadd.xlane.f32.xlu1 %v1756_v0 }
0x1268   :  { %v3197_v4 = vpop.xlane.xlu0 %3196 }
0x1269   :  { %v3201_v2 = vmul.f32 0.03125, %v3197_v4 }
0x126a   :  { %v3200_v51 = vpop.xlane.xlu1 %3199 }
0x126b   :  { %v3203_v42 = vadd.f32 1e-05, %v3201_v2  ;;  %v3202_v22 = vmul.f32 0.03125, %v3200_v51 }
0x126d   :  { %4039 = vrsqrt.f32 %v3203_v42  ;;  %v3204_v23 = vadd.f32 1e-05, %v3202_v22 }
0x126f   :  { %4041 = vrsqrt.f32 %v3204_v23 }
0x1277   :  { %v4040_v26 = vpop.eup %4039 }
0x1278   :  { %v3207_v27 = vmul.f32 %v4040_v26, %v3191_v56 }
0x1279   :  { %v4042_v53 = vpop.eup %4041 }
0x127a   :  { %v3209_v20 = vmul.f32 %v3207_v27, %v1742_v28  ;;  %v3208_v55 = vmul.f32 %v4042_v53, %v3192_v47 }
0x127c   :  { %v3211_v7 = vadd.f32 %v3209_v20, %v1748_v17  ;;  %v3210_v10 = vmul.f32 %v3208_v55, %v1742_v28  ;;  %v1788_v28 = vrot.slane %v4979_v34, %v1787_v46 }
0x127d   :  { %v1755_v54 = vpop.xlane.xlu0 %1754 }
0x127e   :  { %v1759_v41 = vmul.f32 0.03125, %v1755_v54  ;;  %v3213_v21 = vadd.f32 %v3211_v7, %v4961_v24  ;;  %v3212_v18 = vadd.f32 %v3210_v10, %v1748_v17 }
0x127f   :  { %v1758_v57 = vpop.xlane.xlu1 %1757 }
0x1280   :  { %v1761_v62 = vsub.f32 %v1751_v43, %v1759_v41  ;;  %v1760_v19 = vmul.f32 0.03125, %v1758_v57  ;;  %v3215_v25 = vsel %vm136_vm1, %v3213_v21, 0.0  ;;  %v3214_v36 = vadd.f32 %v3212_v18, %v4964_v1 }
0x1281   :  { %3216 = vadd.xlane.f32.xlu0 %v3215_v25 }
0x1282   :  { %v1762_v11 = vsub.f32 %v1752_v30, %v1760_v19  ;;  %v3218_v12 = vsel %vm136_vm1, %v3214_v36, 0.0  ;;  %v1763_v59 = vmul.f32 %v1761_v62, %v1761_v62 }
0x1283   :  { %3219 = vadd.xlane.f32.xlu1 %v3218_v12 }
0x1284   :  { %v1765_v63 = vsel %vm136_vm1, %v1763_v59, 0.0  ;;  %v1764_v60 = vmul.f32 %v1762_v11, %v1762_v11 }
0x1285   :  { %1766 = vadd.xlane.f32.xlu0 %v1765_v63 }
0x1286   :  { %v1768_v24 = vsel %vm136_vm1, %v1764_v60, 0.0 }
0x1287   :  { %1769 = vadd.xlane.f32.xlu1 %v1768_v24 }
0x130e   :  { %v3217_v50 = vpop.xlane.xlu0 %3216 }
0x130f   :  { %v3221_v16 = vmul.f32 0.03125, %v3217_v50 }
0x1310   :  { %v3220_v14 = vpop.xlane.xlu1 %3219 }
0x1311   :  { %v3223_v15 = vsub.f32 %v3213_v21, %v3221_v16  ;;  %v3222_v56 = vmul.f32 0.03125, %v3220_v14 }
0x1312   :  { %v1767_v3 = vpop.xlane.xlu0 %1766 }
0x1313   :  { %v3224_v1 = vsub.f32 %v3214_v36, %v3222_v56  ;;  %v1771_v58 = vmul.f32 0.03125, %v1767_v3  ;;  %v3225_v47 = vmul.f32 %v3223_v15, %v3223_v15 }
0x1314   :  { %v1770_v45 = vpop.xlane.xlu1 %1769 }
0x1315   :  { %v1773_v13 = vadd.f32 1e-05, %v1771_v58  ;;  %v1772_v9 = vmul.f32 0.03125, %v1770_v45  ;;  %v3227_v48 = vsel %vm136_vm1, %v3225_v47, 0.0  ;;  %v3226_v37 = vmul.f32 %v3224_v1, %v3224_v1 }
0x1316   :  { %3228 = vadd.xlane.f32.xlu0 %v3227_v48 }
0x1317   :  { %4043 = vrsqrt.f32 %v1773_v13  ;;  %v1774_v35 = vadd.f32 1e-05, %v1772_v9  ;;  %v3230_v61 = vsel %vm136_vm1, %v3226_v37, 0.0 }
0x1318   :  { %3231 = vadd.xlane.f32.xlu1 %v3230_v61 }
0x1319   :  { %4045 = vrsqrt.f32 %v1774_v35 }
0x1321   :  { %v4044_v29 = vpop.eup %4043 }
0x1322   :  { %v1777_v31 = vmul.f32 %v4044_v29, %v1761_v62 }
0x1323   :  { %v4046_v39 = vpop.eup %4045 }
0x1324   :  { %v1783_v17 = vmul.f32 %v1782_v44, %v1777_v31  ;;  %v1778_v8 = vmul.f32 %v4046_v39, %v1762_v11 }
0x1326   :  { %v1789_v33 = vadd.f32 %v1788_v28, %v1783_v17  ;;  %v1784_v32 = vmul.f32 %v1782_v44, %v1778_v8 }
0x1328   :  { %1791 = vst.msk [vmem:[#allocation2] sm:$0xff] %vm136_vm1, %v1789_v33  ;;  %v1790_v38 = vadd.f32 %v1788_v28, %v1784_v32 }
0x132a   :  { %1792 = vst.msk [vmem:[#allocation2 + $0x8] sm:$0xff] %vm136_vm1, %v1790_v38 }
0x13a3   :  { %v3229_v40 = vpop.xlane.xlu0 %3228 }
0x13a4   :  { %v3233_v43 = vmul.f32 0.03125, %v3229_v40 }
0x13a5   :  { %v3232_v49 = vpop.xlane.xlu1 %3231 }
0x13a6   :  { %v3235_v52 = vadd.f32 1e-05, %v3233_v43  ;;  %v3234_v6 = vmul.f32 0.03125, %v3232_v49 }
0x13a8   :  { %4047 = vrsqrt.f32 %v3235_v52  ;;  %v3236_v30 = vadd.f32 1e-05, %v3234_v6 }
0x13aa   :  { %4049 = vrsqrt.f32 %v3236_v30 }
0x13b2   :  { %v4048_v34 = vpop.eup %4047 }
0x13b3   :  { %v3239_v0 = vmul.f32 %v4048_v34, %v3223_v15 }
0x13b4   :  { %v4050_v4 = vpop.eup %4049 }
0x13b5   :  { %v3241_v2 = vmul.f32 %v3239_v0, %v1782_v44  ;;  %v3240_v51 = vmul.f32 %v4050_v4, %v3224_v1 }
0x13b7   :  { %v3243_v42 = vadd.f32 %v3241_v2, %v1788_v28  ;;  %v3242_v22 = vmul.f32 %v3240_v51, %v1782_v44 }
0x13b9   :  { %3246 = vst.msk [vmem:[#allocation2 + $0x10] sm:$0xff] %vm136_vm1, %v3243_v42  ;;  %v3244_v23 = vadd.f32 %v3242_v22, %v1788_v28 }
0x13bb   :  { %3247 = vst.msk [vmem:[#allocation2 + $0x18] sm:$0xff] %vm136_vm1, %v3244_v23 }
0x13bc   :  { %4083 = shalt.err (!%p4080_p4)
}
0x13bd   :  { %s4084_s10 = scalar_lea.hbm %s5023_s8, 512 }
0x13be   :  { %p4085_p5 = scmp.ne.s32.totalorder %s5023_s8, %s4084_s10  ;;  %p4088_p6 = scmp.lt.u32.totalorder %s4084_s10, %s5023_s8 }
0x13c0   :  { %p4090_p7 = pnand %p4088_p6, %p4085_p5 }
0x13c2   :  { %4093 = shalt.err (!%p4090_p7)
}
0x13c3   :  { %s4100_s14 = smov 128   ;;  %s4101_s15 = smov 8  }
0x13c4   :  { %3259 = dma.vmem_to_hbm [thread:$0]  %s3254_s0, 512, %s5023_s8, [#allocation3], %s4100_s14, %s4100_s14, %s4101_s15  }
0x13c5   :  { %4094 = dma.done.wait [#allocation3], 512  }
0x13c6   :  { %4095 = vsyncadd [#allocation3], 4294966784 }
0x13c7   :  { %3263 = vsyncpa [#allocation3], 1 }

</bundles_post_ra>
